<compile_context>
chip_gen: v7x
topology: tpu7x:2x2x1
jax: 0.10.0
libtpu: 0.0.40
codegen_flags: <defaults>
</compile_context>

<pallas_src>
import functools

import jax
import jax.numpy as jnp
from jax import lax
from jax.experimental import pallas as pl
from jax.experimental.pallas import tpu as pltpu


def _shift_lanes(xb, off):
    """Zero-filled shift along the flattened-spatial (lane) axis.

    result[:, p] = xb[:, p + off] if 0 <= p + off < hw else 0.
    """
    if off == 0:
        return xb
    cdim, n = xb.shape
    fill = jnp.zeros((cdim, abs(off)), xb.dtype)
    if off > 0:
        return jnp.concatenate([xb[:, off:], fill], axis=1)
    return jnp.concatenate([fill, xb[:, : n + off]], axis=1)


def _channel_block_kernel(x_ref, w_ref, b_ref, att_ref, y_ref, *, w):
    bt, c, hw = x_ref.shape
    wts = w_ref[...]                     # (9, c, c)  tap-major conv weights
    bias = b_ref[...]                    # (c, 1)

    # column index of every flattened-spatial position (for conv edge masks)
    col = lax.broadcasted_iota(jnp.int32, (c, hw), 1) % w

    for bb in range(bt):                 # unrolled batch loop inside the block
        xb = x_ref[bb]                   # (c, hw)

        # ---- 3x3 conv, padding=1: 9 shifted (c,c)@(c,hw) matmuls in VMEM ----
        acc = jnp.zeros((c, hw), jnp.float32)
        for t in range(9):
            ky, kx = t // 3, t % 3
            dy, dx = ky - 1, kx - 1
            shifted = _shift_lanes(xb, dy * w + dx)
            if dx != 0:
                # kill values that wrapped across a row boundary
                valid = (col + dx >= 0) & (col + dx < w)
                shifted = jnp.where(valid, shifted, 0.0)
            acc = acc + jnp.dot(wts[t], shifted,
                                preferred_element_type=jnp.float32)
        y = acc + bias                   # (c, hw)  conv output

        # ---- channel self-attention ----
        # A = y @ y^T -> (c, c)
        a = lax.dot_general(y, y, (((1,), (1,)), ((), ())),
                            preferred_element_type=jnp.float32)
        # torch.softmax(x_cxc, dim=1) on the (b,c,c) tensor == softmax over
        # axis 0 of the per-batch (c,c) matrix.  Do NOT "fix" this to axis 1.
        a = a - jnp.max(a, axis=0, keepdims=True)        # keep f32 max-sub
        e = jnp.exp(a)
        s = e * pl.reciprocal(jnp.sum(e, axis=0, keepdims=True), approx=True)
        # out = y^T @ s -> (hw, c), matching torch.bmm(x_hwxc, softmax(...))
        out = lax.dot_general(y, s, (((0,), (0,)), ((), ())),
                              preferred_element_type=jnp.float32)

        att_ref[bb] = out.astype(att_ref.dtype)
        y_ref[bb] = y.astype(y_ref.dtype)


def _pick_bt(b, c, hw, cap=8, budget_bytes=4 << 20):
    """Largest divisor of b (<= cap) whose double-buffered blocks fit budget."""
    best = 1
    for cand in range(1, min(b, cap) + 1):
        if b % cand == 0 and 2 * 3 * cand * c * hw * 4 <= budget_bytes:
            best = cand
    return best


def channel_block1(x, weight, bias, mode="residual"):
    """Pallas TPU forward of ChannelBlock1.

    x: (b, c, h, w) f32;  weight: (c, c, 3, 3) (torch OIHW);  bias: (c,)
    """
    b, c, h, w = x.shape
    hw = h * w
    bt = _pick_bt(b, c, hw)

    x_flat = x.reshape(b, c, hw)                          # free bitcast
    # tap-major weights: w_taps[ky*3 + kx] == weight[:, :, ky, kx]
    w_taps = jnp.transpose(weight, (2, 3, 0, 1)).reshape(9, c, c)
    bias_col = bias.reshape(c, 1)

    per_step_bytes = 4 * (3 * bt * c * hw + 9 * c * c + c)
    vmem_limit = max(4 << 20, min(48 << 20, 8 * per_step_bytes))

    out_att, y_conv = pl.pallas_call(
        functools.partial(_channel_block_kernel, w=w),
        out_shape=(jax.ShapeDtypeStruct((b, hw, c), jnp.float32),
                   jax.ShapeDtypeStruct((b, c, hw), jnp.float32)),
        grid_spec=pltpu.PrefetchScalarGridSpec(
            num_scalar_prefetch=0,
            grid=(b // bt,),
            in_specs=[
                pl.BlockSpec((bt, c, hw), lambda i: (i, 0, 0)),
                pl.BlockSpec((9, c, c), lambda i: (0, 0, 0)),
                pl.BlockSpec((c, 1), lambda i: (0, 0)),
            ],
            out_specs=[
                pl.BlockSpec((bt, hw, c), lambda i: (i, 0, 0)),
                pl.BlockSpec((bt, c, hw), lambda i: (i, 0, 0)),
            ],
        ),
        compiler_params=pltpu.CompilerParams(
            dimension_semantics=("parallel",),
            vmem_limit_bytes=vmem_limit),
    )(x_flat, w_taps, bias_col)

    # torch: out.view(b, c, h, w) is a raw row-major reinterpret of (b, hw, c);
    # the reshape below is a free bitcast and the residual add (against the
    # conv output, since torch reassigns x = self.conv(x)) fuses into a single
    # elementwise XLA kernel.
    res = out_att.reshape(b, c, hw)
    if mode == "residual":
        res = res + y_conv
    return res.reshape(b, c, h, w)


# ---------------- pure-JAX reference (verification only) ----------------
def _reference(x, weight, bias, mode="residual"):
    b, c, h, w = x.shape
    hw = h * w
    y = lax.conv_general_dilated(x, weight, (1, 1), ((1, 1), (1, 1)),
                                 dimension_numbers=("NCHW", "OIHW", "NCHW"))
    y = y + bias.reshape(1, -1, 1, 1)
    y_cxhw = y.reshape(b, c, hw)
    y_hwxc = jnp.transpose(y_cxhw, (0, 2, 1))
    a = jnp.einsum("bcp,bpd->bcd", y_cxhw, y_hwxc)
    s = jax.nn.softmax(a, axis=1)
    out = jnp.einsum("bpc,bcd->bpd", y_hwxc, s)           # (b, hw, c)
    out = out.reshape(b, c, h, w)                         # torch .view semantics
    return out + y if mode == "residual" else out


if __name__ == "__main__":
    b, c, h, w = 2, 4, 16, 16
    key = jax.random.PRNGKey(0)
    kx, kw, kb = jax.random.split(key, 3)

    x = jax.random.normal(kx, (b, c, h, w), dtype=jnp.float32)
    weight = jax.random.uniform(kw, (c, c, 3, 3), jnp.float32, -0.15, 0.15)
    bias = jax.random.uniform(kb, (c,), jnp.float32, -0.15, 0.15)

    out = channel_block1(x, weight, bias, mode="residual")
    out = jax.block_until_ready(out)

    ref = _reference(x, weight, bias, mode="residual")
    assert out.shape == (b, c, h, w)
    # tolerance covers the approx-reciprocal (EUP vrcp) softmax normalisation
    assert jnp.allclose(out, ref, atol=2e-3, rtol=2e-3), (
        f"max abs err {jnp.max(jnp.abs(out - ref))}")
    print("KERNEL_OK")
</pallas_src>

<mosaic_0001>
module attributes {stable_mosaic.version = 11 : i64} {
  func.func @_channel_block_kernel(%arg0: i32, %arg1: memref<2x4x256xf32, #tpu.memory_space<vmem>>, %arg2: memref<9x4x4xf32, #tpu.memory_space<vmem>>, %arg3: memref<4x1xf32, #tpu.memory_space<vmem>>, %arg4: memref<2x256x4xf32, #tpu.memory_space<vmem>>, %arg5: memref<2x4x256xf32, #tpu.memory_space<vmem>>) attributes {dimension_semantics = [#tpu.dimension_semantics<parallel>], iteration_bounds = array<i64: 1>, scalar_prefetch = 0 : i64, scratch_operands = 0 : i64, tpu.core_type = #tpu.core_type<tc>, window_params = [{transform_indices = @transform_0, window_bounds = array<i64: 2, 4, 256>}, {pipeline_mode = #tpu.pipeline_mode<synchronous>, transform_indices = @transform_1, window_bounds = array<i64: 9, 4, 4>}, {pipeline_mode = #tpu.pipeline_mode<synchronous>, transform_indices = @transform_2, window_bounds = array<i64: 4, 1>}, {transform_indices = @transform_3, window_bounds = array<i64: 2, 256, 4>}, {transform_indices = @transform_4, window_bounds = array<i64: 2, 4, 256>}]} {
    %c0 = arith.constant 0 : index
    %c0_0 = arith.constant 0 : index
    %c0_1 = arith.constant 0 : index
    %0 = vector.load %arg2[%c0, %c0_0, %c0_1] : memref<9x4x4xf32, #tpu.memory_space<vmem>>, vector<9x4x4xf32>
    %c0_2 = arith.constant 0 : index
    %c0_3 = arith.constant 0 : index
    %1 = vector.load %arg3[%c0_2, %c0_3] : memref<4x1xf32, #tpu.memory_space<vmem>>, vector<4x1xf32>
    %2 = tpu.iota {dimensions = array<i32: 1>} : vector<4x256xi32>
    %c16_i32 = arith.constant 16 : i32
    %c0_i32 = arith.constant 0 : i32
    %3 = arith.cmpi eq, %c16_i32, %c0_i32 : i32
    %c1_i32 = arith.constant 1 : i32
    %4 = arith.select %3, %c1_i32, %c16_i32 : i32
    %5 = vector.broadcast %4 : i32 to vector<4x256xi32>
    %6 = arith.remsi %2, %5 : vector<4x256xi32>
    %c0_i32_4 = arith.constant 0 : i32
    %7 = vector.broadcast %c0_i32_4 : i32 to vector<4x256xi32>
    %8 = arith.cmpi ne, %6, %7 : vector<4x256xi32>
    %c0_i32_5 = arith.constant 0 : i32
    %9 = vector.broadcast %c0_i32_5 : i32 to vector<4x256xi32>
    %10 = arith.cmpi slt, %6, %9 : vector<4x256xi32>
    %c0_i32_6 = arith.constant 0 : i32
    %11 = arith.cmpi slt, %4, %c0_i32_6 : i32
    %12 = vector.broadcast %11 : i1 to vector<4x256xi1>
    %13 = vector.broadcast %12 : vector<4x256xi1> to vector<4x256xi1>
    %14 = arith.xori %10, %13 : vector<4x256xi1>
    %15 = arith.andi %14, %8 : vector<4x256xi1>
    %16 = vector.broadcast %4 : i32 to vector<4x256xi32>
    %17 = arith.addi %6, %16 : vector<4x256xi32>
    %18 = arith.select %15, %17, %6 : vector<4x256xi1>, vector<4x256xi32>
    %c0_7 = arith.constant 0 : index
    %c0_8 = arith.constant 0 : index
    %c0_9 = arith.constant 0 : index
    %19 = vector.load %arg1[%c0_7, %c0_8, %c0_9] : memref<2x4x256xf32, #tpu.memory_space<vmem>>, vector<1x4x256xf32>
    %20 = vector.shape_cast %19 : vector<1x4x256xf32> to vector<4x256xf32>
    %cst = arith.constant 0.000000e+00 : f32
    %21 = vector.broadcast %cst : f32 to vector<4x256xf32>
    %cst_10 = arith.constant 0.000000e+00 : f32
    %22 = vector.broadcast %cst_10 : f32 to vector<4x17xf32>
    %23 = vector.extract_strided_slice %20 {offsets = [0, 0], sizes = [4, 239], strides = [1, 1]} : vector<4x256xf32> to vector<4x239xf32>
    %24 = tpu.concatenate %22, %23 in 1 : vector<4x17xf32>, vector<4x239xf32> -> vector<4x256xf32>
    %c-1_i32 = arith.constant -1 : i32
    %25 = vector.broadcast %c-1_i32 : i32 to vector<4x256xi32>
    %26 = arith.addi %18, %25 : vector<4x256xi32>
    %c0_i32_11 = arith.constant 0 : i32
    %27 = vector.broadcast %c0_i32_11 : i32 to vector<4x256xi32>
    %28 = arith.cmpi sge, %26, %27 : vector<4x256xi32>
    %c-1_i32_12 = arith.constant -1 : i32
    %29 = vector.broadcast %c-1_i32_12 : i32 to vector<4x256xi32>
    %30 = arith.addi %18, %29 : vector<4x256xi32>
    %c16_i32_13 = arith.constant 16 : i32
    %31 = vector.broadcast %c16_i32_13 : i32 to vector<4x256xi32>
    %32 = arith.cmpi slt, %30, %31 : vector<4x256xi32>
    %33 = arith.andi %28, %32 : vector<4x256xi1>
    %cst_14 = arith.constant 0.000000e+00 : f32
    %34 = vector.broadcast %cst_14 : f32 to vector<4x256xf32>
    %35 = arith.select %33, %24, %34 : vector<4x256xi1>, vector<4x256xf32>
    %36 = vector.extract_strided_slice %0 {offsets = [0, 0, 0], sizes = [1, 4, 4], strides = [1, 1, 1]} : vector<9x4x4xf32> to vector<1x4x4xf32>
    %37 = vector.shape_cast %36 : vector<1x4x4xf32> to vector<4x4xf32>
    %cst_15 = arith.constant dense<0.000000e+00> : vector<4x256xf32>
    %38 = tpu.matmul %37, %35, %cst_15 {dimension_numbers = #tpu.dot_dimension_numbers<[1], [0], [0], [1], [0, 0, 1, 1], [], []>} : vector<4x4xf32>, vector<4x256xf32>, vector<4x256xf32> -> vector<4x256xf32>
    %39 = arith.addf %21, %38 : vector<4x256xf32>
    %cst_16 = arith.constant 0.000000e+00 : f32
    %40 = vector.broadcast %cst_16 : f32 to vector<4x16xf32>
    %41 = vector.extract_strided_slice %20 {offsets = [0, 0], sizes = [4, 240], strides = [1, 1]} : vector<4x256xf32> to vector<4x240xf32>
    %42 = tpu.concatenate %40, %41 in 1 : vector<4x16xf32>, vector<4x240xf32> -> vector<4x256xf32>
    %43 = vector.extract_strided_slice %0 {offsets = [1, 0, 0], sizes = [1, 4, 4], strides = [1, 1, 1]} : vector<9x4x4xf32> to vector<1x4x4xf32>
    %44 = vector.shape_cast %43 : vector<1x4x4xf32> to vector<4x4xf32>
    %cst_17 = arith.constant dense<0.000000e+00> : vector<4x256xf32>
    %45 = tpu.matmul %44, %42, %cst_17 {dimension_numbers = #tpu.dot_dimension_numbers<[1], [0], [0], [1], [0, 0, 1, 1], [], []>} : vector<4x4xf32>, vector<4x256xf32>, vector<4x256xf32> -> vector<4x256xf32>
    %46 = arith.addf %39, %45 : vector<4x256xf32>
    %cst_18 = arith.constant 0.000000e+00 : f32
    %47 = vector.broadcast %cst_18 : f32 to vector<4x15xf32>
    %48 = vector.extract_strided_slice %20 {offsets = [0, 0], sizes = [4, 241], strides = [1, 1]} : vector<4x256xf32> to vector<4x241xf32>
    %49 = tpu.concatenate %47, %48 in 1 : vector<4x15xf32>, vector<4x241xf32> -> vector<4x256xf32>
    %c1_i32_19 = arith.constant 1 : i32
    %50 = vector.broadcast %c1_i32_19 : i32 to vector<4x256xi32>
    %51 = arith.addi %18, %50 : vector<4x256xi32>
    %c0_i32_20 = arith.constant 0 : i32
    %52 = vector.broadcast %c0_i32_20 : i32 to vector<4x256xi32>
    %53 = arith.cmpi sge, %51, %52 : vector<4x256xi32>
    %c1_i32_21 = arith.constant 1 : i32
    %54 = vector.broadcast %c1_i32_21 : i32 to vector<4x256xi32>
    %55 = arith.addi %18, %54 : vector<4x256xi32>
    %c16_i32_22 = arith.constant 16 : i32
    %56 = vector.broadcast %c16_i32_22 : i32 to vector<4x256xi32>
    %57 = arith.cmpi slt, %55, %56 : vector<4x256xi32>
    %58 = arith.andi %53, %57 : vector<4x256xi1>
    %cst_23 = arith.constant 0.000000e+00 : f32
    %59 = vector.broadcast %cst_23 : f32 to vector<4x256xf32>
    %60 = arith.select %58, %49, %59 : vector<4x256xi1>, vector<4x256xf32>
    %61 = vector.extract_strided_slice %0 {offsets = [2, 0, 0], sizes = [1, 4, 4], strides = [1, 1, 1]} : vector<9x4x4xf32> to vector<1x4x4xf32>
    %62 = vector.shape_cast %61 : vector<1x4x4xf32> to vector<4x4xf32>
    %cst_24 = arith.constant dense<0.000000e+00> : vector<4x256xf32>
    %63 = tpu.matmul %62, %60, %cst_24 {dimension_numbers = #tpu.dot_dimension_numbers<[1], [0], [0], [1], [0, 0, 1, 1], [], []>} : vector<4x4xf32>, vector<4x256xf32>, vector<4x256xf32> -> vector<4x256xf32>
    %64 = arith.addf %46, %63 : vector<4x256xf32>
    %cst_25 = arith.constant 0.000000e+00 : f32
    %65 = vector.broadcast %cst_25 : f32 to vector<4x1xf32>
    %66 = vector.extract_strided_slice %20 {offsets = [0, 0], sizes = [4, 255], strides = [1, 1]} : vector<4x256xf32> to vector<4x255xf32>
    %67 = tpu.concatenate %65, %66 in 1 : vector<4x1xf32>, vector<4x255xf32> -> vector<4x256xf32>
    %c-1_i32_26 = arith.constant -1 : i32
    %68 = vector.broadcast %c-1_i32_26 : i32 to vector<4x256xi32>
    %69 = arith.addi %18, %68 : vector<4x256xi32>
    %c0_i32_27 = arith.constant 0 : i32
    %70 = vector.broadcast %c0_i32_27 : i32 to vector<4x256xi32>
    %71 = arith.cmpi sge, %69, %70 : vector<4x256xi32>
    %c-1_i32_28 = arith.constant -1 : i32
    %72 = vector.broadcast %c-1_i32_28 : i32 to vector<4x256xi32>
    %73 = arith.addi %18, %72 : vector<4x256xi32>
    %c16_i32_29 = arith.constant 16 : i32
    %74 = vector.broadcast %c16_i32_29 : i32 to vector<4x256xi32>
    %75 = arith.cmpi slt, %73, %74 : vector<4x256xi32>
    %76 = arith.andi %71, %75 : vector<4x256xi1>
    %cst_30 = arith.constant 0.000000e+00 : f32
    %77 = vector.broadcast %cst_30 : f32 to vector<4x256xf32>
    %78 = arith.select %76, %67, %77 : vector<4x256xi1>, vector<4x256xf32>
    %79 = vector.extract_strided_slice %0 {offsets = [3, 0, 0], sizes = [1, 4, 4], strides = [1, 1, 1]} : vector<9x4x4xf32> to vector<1x4x4xf32>
    %80 = vector.shape_cast %79 : vector<1x4x4xf32> to vector<4x4xf32>
    %cst_31 = arith.constant dense<0.000000e+00> : vector<4x256xf32>
    %81 = tpu.matmul %80, %78, %cst_31 {dimension_numbers = #tpu.dot_dimension_numbers<[1], [0], [0], [1], [0, 0, 1, 1], [], []>} : vector<4x4xf32>, vector<4x256xf32>, vector<4x256xf32> -> vector<4x256xf32>
    %82 = arith.addf %64, %81 : vector<4x256xf32>
    %83 = vector.extract_strided_slice %0 {offsets = [4, 0, 0], sizes = [1, 4, 4], strides = [1, 1, 1]} : vector<9x4x4xf32> to vector<1x4x4xf32>
    %84 = vector.shape_cast %83 : vector<1x4x4xf32> to vector<4x4xf32>
    %cst_32 = arith.constant dense<0.000000e+00> : vector<4x256xf32>
    %85 = tpu.matmul %84, %20, %cst_32 {dimension_numbers = #tpu.dot_dimension_numbers<[1], [0], [0], [1], [0, 0, 1, 1], [], []>} : vector<4x4xf32>, vector<4x256xf32>, vector<4x256xf32> -> vector<4x256xf32>
    %86 = arith.addf %82, %85 : vector<4x256xf32>
    %cst_33 = arith.constant 0.000000e+00 : f32
    %87 = vector.broadcast %cst_33 : f32 to vector<4x1xf32>
    %88 = vector.extract_strided_slice %20 {offsets = [0, 1], sizes = [4, 255], strides = [1, 1]} : vector<4x256xf32> to vector<4x255xf32>
    %89 = tpu.concatenate %88, %87 in 1 : vector<4x255xf32>, vector<4x1xf32> -> vector<4x256xf32>
    %c1_i32_34 = arith.constant 1 : i32
    %90 = vector.broadcast %c1_i32_34 : i32 to vector<4x256xi32>
    %91 = arith.addi %18, %90 : vector<4x256xi32>
    %c0_i32_35 = arith.constant 0 : i32
    %92 = vector.broadcast %c0_i32_35 : i32 to vector<4x256xi32>
    %93 = arith.cmpi sge, %91, %92 : vector<4x256xi32>
    %c1_i32_36 = arith.constant 1 : i32
    %94 = vector.broadcast %c1_i32_36 : i32 to vector<4x256xi32>
    %95 = arith.addi %18, %94 : vector<4x256xi32>
    %c16_i32_37 = arith.constant 16 : i32
    %96 = vector.broadcast %c16_i32_37 : i32 to vector<4x256xi32>
    %97 = arith.cmpi slt, %95, %96 : vector<4x256xi32>
    %98 = arith.andi %93, %97 : vector<4x256xi1>
    %cst_38 = arith.constant 0.000000e+00 : f32
    %99 = vector.broadcast %cst_38 : f32 to vector<4x256xf32>
    %100 = arith.select %98, %89, %99 : vector<4x256xi1>, vector<4x256xf32>
    %101 = vector.extract_strided_slice %0 {offsets = [5, 0, 0], sizes = [1, 4, 4], strides = [1, 1, 1]} : vector<9x4x4xf32> to vector<1x4x4xf32>
    %102 = vector.shape_cast %101 : vector<1x4x4xf32> to vector<4x4xf32>
    %cst_39 = arith.constant dense<0.000000e+00> : vector<4x256xf32>
    %103 = tpu.matmul %102, %100, %cst_39 {dimension_numbers = #tpu.dot_dimension_numbers<[1], [0], [0], [1], [0, 0, 1, 1], [], []>} : vector<4x4xf32>, vector<4x256xf32>, vector<4x256xf32> -> vector<4x256xf32>
    %104 = arith.addf %86, %103 : vector<4x256xf32>
    %cst_40 = arith.constant 0.000000e+00 : f32
    %105 = vector.broadcast %cst_40 : f32 to vector<4x15xf32>
    %106 = vector.extract_strided_slice %20 {offsets = [0, 15], sizes = [4, 241], strides = [1, 1]} : vector<4x256xf32> to vector<4x241xf32>
    %107 = tpu.concatenate %106, %105 in 1 : vector<4x241xf32>, vector<4x15xf32> -> vector<4x256xf32>
    %c-1_i32_41 = arith.constant -1 : i32
    %108 = vector.broadcast %c-1_i32_41 : i32 to vector<4x256xi32>
    %109 = arith.addi %18, %108 : vector<4x256xi32>
    %c0_i32_42 = arith.constant 0 : i32
    %110 = vector.broadcast %c0_i32_42 : i32 to vector<4x256xi32>
    %111 = arith.cmpi sge, %109, %110 : vector<4x256xi32>
    %c-1_i32_43 = arith.constant -1 : i32
    %112 = vector.broadcast %c-1_i32_43 : i32 to vector<4x256xi32>
    %113 = arith.addi %18, %112 : vector<4x256xi32>
    %c16_i32_44 = arith.constant 16 : i32
    %114 = vector.broadcast %c16_i32_44 : i32 to vector<4x256xi32>
    %115 = arith.cmpi slt, %113, %114 : vector<4x256xi32>
    %116 = arith.andi %111, %115 : vector<4x256xi1>
    %cst_45 = arith.constant 0.000000e+00 : f32
    %117 = vector.broadcast %cst_45 : f32 to vector<4x256xf32>
    %118 = arith.select %116, %107, %117 : vector<4x256xi1>, vector<4x256xf32>
    %119 = vector.extract_strided_slice %0 {offsets = [6, 0, 0], sizes = [1, 4, 4], strides = [1, 1, 1]} : vector<9x4x4xf32> to vector<1x4x4xf32>
    %120 = vector.shape_cast %119 : vector<1x4x4xf32> to vector<4x4xf32>
    %cst_46 = arith.constant dense<0.000000e+00> : vector<4x256xf32>
    %121 = tpu.matmul %120, %118, %cst_46 {dimension_numbers = #tpu.dot_dimension_numbers<[1], [0], [0], [1], [0, 0, 1, 1], [], []>} : vector<4x4xf32>, vector<4x256xf32>, vector<4x256xf32> -> vector<4x256xf32>
    %122 = arith.addf %104, %121 : vector<4x256xf32>
    %cst_47 = arith.constant 0.000000e+00 : f32
    %123 = vector.broadcast %cst_47 : f32 to vector<4x16xf32>
    %124 = vector.extract_strided_slice %20 {offsets = [0, 16], sizes = [4, 240], strides = [1, 1]} : vector<4x256xf32> to vector<4x240xf32>
    %125 = tpu.concatenate %124, %123 in 1 : vector<4x240xf32>, vector<4x16xf32> -> vector<4x256xf32>
    %126 = vector.extract_strided_slice %0 {offsets = [7, 0, 0], sizes = [1, 4, 4], strides = [1, 1, 1]} : vector<9x4x4xf32> to vector<1x4x4xf32>
    %127 = vector.shape_cast %126 : vector<1x4x4xf32> to vector<4x4xf32>
    %cst_48 = arith.constant dense<0.000000e+00> : vector<4x256xf32>
    %128 = tpu.matmul %127, %125, %cst_48 {dimension_numbers = #tpu.dot_dimension_numbers<[1], [0], [0], [1], [0, 0, 1, 1], [], []>} : vector<4x4xf32>, vector<4x256xf32>, vector<4x256xf32> -> vector<4x256xf32>
    %129 = arith.addf %122, %128 : vector<4x256xf32>
    %cst_49 = arith.constant 0.000000e+00 : f32
    %130 = vector.broadcast %cst_49 : f32 to vector<4x17xf32>
    %131 = vector.extract_strided_slice %20 {offsets = [0, 17], sizes = [4, 239], strides = [1, 1]} : vector<4x256xf32> to vector<4x239xf32>
    %132 = tpu.concatenate %131, %130 in 1 : vector<4x239xf32>, vector<4x17xf32> -> vector<4x256xf32>
    %c1_i32_50 = arith.constant 1 : i32
    %133 = vector.broadcast %c1_i32_50 : i32 to vector<4x256xi32>
    %134 = arith.addi %18, %133 : vector<4x256xi32>
    %c0_i32_51 = arith.constant 0 : i32
    %135 = vector.broadcast %c0_i32_51 : i32 to vector<4x256xi32>
    %136 = arith.cmpi sge, %134, %135 : vector<4x256xi32>
    %c1_i32_52 = arith.constant 1 : i32
    %137 = vector.broadcast %c1_i32_52 : i32 to vector<4x256xi32>
    %138 = arith.addi %18, %137 : vector<4x256xi32>
    %c16_i32_53 = arith.constant 16 : i32
    %139 = vector.broadcast %c16_i32_53 : i32 to vector<4x256xi32>
    %140 = arith.cmpi slt, %138, %139 : vector<4x256xi32>
    %141 = arith.andi %136, %140 : vector<4x256xi1>
    %cst_54 = arith.constant 0.000000e+00 : f32
    %142 = vector.broadcast %cst_54 : f32 to vector<4x256xf32>
    %143 = arith.select %141, %132, %142 : vector<4x256xi1>, vector<4x256xf32>
    %144 = vector.extract_strided_slice %0 {offsets = [8, 0, 0], sizes = [1, 4, 4], strides = [1, 1, 1]} : vector<9x4x4xf32> to vector<1x4x4xf32>
    %145 = vector.shape_cast %144 : vector<1x4x4xf32> to vector<4x4xf32>
    %cst_55 = arith.constant dense<0.000000e+00> : vector<4x256xf32>
    %146 = tpu.matmul %145, %143, %cst_55 {dimension_numbers = #tpu.dot_dimension_numbers<[1], [0], [0], [1], [0, 0, 1, 1], [], []>} : vector<4x4xf32>, vector<4x256xf32>, vector<4x256xf32> -> vector<4x256xf32>
    %147 = arith.addf %129, %146 : vector<4x256xf32>
    %148 = vector.broadcast %1 : vector<4x1xf32> to vector<4x256xf32>
    %149 = arith.addf %147, %148 : vector<4x256xf32>
    %cst_56 = arith.constant dense<0.000000e+00> : vector<4x4xf32>
    %150 = tpu.matmul %149, %149, %cst_56 {dimension_numbers = #tpu.dot_dimension_numbers<[1], [1], [0], [0], [0, 0, 1, 0], [], []>} : vector<4x256xf32>, vector<4x256xf32>, vector<4x4xf32> -> vector<4x4xf32>
    %cst_57 = arith.constant dense<0xFF800000> : vector<4xf32>
    %151 = vector.multi_reduction <maximumf>, %150, %cst_57 [0] : vector<4x4xf32> to vector<4xf32>
    %152 = vector.shape_cast %151 : vector<4xf32> to vector<1x4xf32>
    %153 = vector.broadcast %152 : vector<1x4xf32> to vector<4x4xf32>
    %154 = arith.subf %150, %153 : vector<4x4xf32>
    %155 = math.exp %154 : vector<4x4xf32>
    %cst_58 = arith.constant dense<0.000000e+00> : vector<4xf32>
    %156 = vector.multi_reduction <add>, %155, %cst_58 [0] : vector<4x4xf32> to vector<4xf32>
    %157 = vector.shape_cast %156 : vector<4xf32> to vector<1x4xf32>
    %158 = tpu.reciprocal %157 {approx = true} : vector<1x4xf32> -> vector<1x4xf32>
    %159 = vector.broadcast %158 : vector<1x4xf32> to vector<4x4xf32>
    %160 = arith.mulf %155, %159 : vector<4x4xf32>
    %cst_59 = arith.constant dense<0.000000e+00> : vector<256x4xf32>
    %161 = tpu.matmul %149, %160, %cst_59 {dimension_numbers = #tpu.dot_dimension_numbers<[0], [0], [1], [1], [0, 1, 1, 1], [], []>} : vector<4x256xf32>, vector<4x4xf32>, vector<256x4xf32> -> vector<256x4xf32>
    %c0_60 = arith.constant 0 : index
    %c0_61 = arith.constant 0 : index
    %c0_62 = arith.constant 0 : index
    %162 = vector.load %arg4[%c0_60, %c0_61, %c0_62] : memref<2x256x4xf32, #tpu.memory_space<vmem>>, vector<1x256x4xf32>
    %163 = vector.shape_cast %162 : vector<1x256x4xf32> to vector<256x4xf32>
    %164 = vector.shape_cast %161 : vector<256x4xf32> to vector<1x256x4xf32>
    tpu.vector_store %arg4[%c0_60, %c0_61, %c0_62], %164 {strides = array<i32>} : memref<2x256x4xf32, #tpu.memory_space<vmem>>, vector<1x256x4xf32>,
    %c0_63 = arith.constant 0 : index
    %c0_64 = arith.constant 0 : index
    %c0_65 = arith.constant 0 : index
    %165 = vector.load %arg5[%c0_63, %c0_64, %c0_65] : memref<2x4x256xf32, #tpu.memory_space<vmem>>, vector<1x4x256xf32>
    %166 = vector.shape_cast %165 : vector<1x4x256xf32> to vector<4x256xf32>
    %167 = vector.shape_cast %149 : vector<4x256xf32> to vector<1x4x256xf32>
    tpu.vector_store %arg5[%c0_63, %c0_64, %c0_65], %167 {strides = array<i32>} : memref<2x4x256xf32, #tpu.memory_space<vmem>>, vector<1x4x256xf32>,
    %c1 = arith.constant 1 : index
    %c0_66 = arith.constant 0 : index
    %c0_67 = arith.constant 0 : index
    %168 = vector.load %arg1[%c1, %c0_66, %c0_67] : memref<2x4x256xf32, #tpu.memory_space<vmem>>, vector<1x4x256xf32>
    %169 = vector.shape_cast %168 : vector<1x4x256xf32> to vector<4x256xf32>
    %cst_68 = arith.constant 0.000000e+00 : f32
    %170 = vector.broadcast %cst_68 : f32 to vector<4x256xf32>
    %cst_69 = arith.constant 0.000000e+00 : f32
    %171 = vector.broadcast %cst_69 : f32 to vector<4x17xf32>
    %172 = vector.extract_strided_slice %169 {offsets = [0, 0], sizes = [4, 239], strides = [1, 1]} : vector<4x256xf32> to vector<4x239xf32>
    %173 = tpu.concatenate %171, %172 in 1 : vector<4x17xf32>, vector<4x239xf32> -> vector<4x256xf32>
    %c-1_i32_70 = arith.constant -1 : i32
    %174 = vector.broadcast %c-1_i32_70 : i32 to vector<4x256xi32>
    %175 = arith.addi %18, %174 : vector<4x256xi32>
    %c0_i32_71 = arith.constant 0 : i32
    %176 = vector.broadcast %c0_i32_71 : i32 to vector<4x256xi32>
    %177 = arith.cmpi sge, %175, %176 : vector<4x256xi32>
    %c-1_i32_72 = arith.constant -1 : i32
    %178 = vector.broadcast %c-1_i32_72 : i32 to vector<4x256xi32>
    %179 = arith.addi %18, %178 : vector<4x256xi32>
    %c16_i32_73 = arith.constant 16 : i32
    %180 = vector.broadcast %c16_i32_73 : i32 to vector<4x256xi32>
    %181 = arith.cmpi slt, %179, %180 : vector<4x256xi32>
    %182 = arith.andi %177, %181 : vector<4x256xi1>
    %cst_74 = arith.constant 0.000000e+00 : f32
    %183 = vector.broadcast %cst_74 : f32 to vector<4x256xf32>
    %184 = arith.select %182, %173, %183 : vector<4x256xi1>, vector<4x256xf32>
    %185 = vector.extract_strided_slice %0 {offsets = [0, 0, 0], sizes = [1, 4, 4], strides = [1, 1, 1]} : vector<9x4x4xf32> to vector<1x4x4xf32>
    %186 = vector.shape_cast %185 : vector<1x4x4xf32> to vector<4x4xf32>
    %cst_75 = arith.constant dense<0.000000e+00> : vector<4x256xf32>
    %187 = tpu.matmul %186, %184, %cst_75 {dimension_numbers = #tpu.dot_dimension_numbers<[1], [0], [0], [1], [0, 0, 1, 1], [], []>} : vector<4x4xf32>, vector<4x256xf32>, vector<4x256xf32> -> vector<4x256xf32>
    %188 = arith.addf %170, %187 : vector<4x256xf32>
    %cst_76 = arith.constant 0.000000e+00 : f32
    %189 = vector.broadcast %cst_76 : f32 to vector<4x16xf32>
    %190 = vector.extract_strided_slice %169 {offsets = [0, 0], sizes = [4, 240], strides = [1, 1]} : vector<4x256xf32> to vector<4x240xf32>
    %191 = tpu.concatenate %189, %190 in 1 : vector<4x16xf32>, vector<4x240xf32> -> vector<4x256xf32>
    %192 = vector.extract_strided_slice %0 {offsets = [1, 0, 0], sizes = [1, 4, 4], strides = [1, 1, 1]} : vector<9x4x4xf32> to vector<1x4x4xf32>
    %193 = vector.shape_cast %192 : vector<1x4x4xf32> to vector<4x4xf32>
    %cst_77 = arith.constant dense<0.000000e+00> : vector<4x256xf32>
    %194 = tpu.matmul %193, %191, %cst_77 {dimension_numbers = #tpu.dot_dimension_numbers<[1], [0], [0], [1], [0, 0, 1, 1], [], []>} : vector<4x4xf32>, vector<4x256xf32>, vector<4x256xf32> -> vector<4x256xf32>
    %195 = arith.addf %188, %194 : vector<4x256xf32>
    %cst_78 = arith.constant 0.000000e+00 : f32
    %196 = vector.broadcast %cst_78 : f32 to vector<4x15xf32>
    %197 = vector.extract_strided_slice %169 {offsets = [0, 0], sizes = [4, 241], strides = [1, 1]} : vector<4x256xf32> to vector<4x241xf32>
    %198 = tpu.concatenate %196, %197 in 1 : vector<4x15xf32>, vector<4x241xf32> -> vector<4x256xf32>
    %c1_i32_79 = arith.constant 1 : i32
    %199 = vector.broadcast %c1_i32_79 : i32 to vector<4x256xi32>
    %200 = arith.addi %18, %199 : vector<4x256xi32>
    %c0_i32_80 = arith.constant 0 : i32
    %201 = vector.broadcast %c0_i32_80 : i32 to vector<4x256xi32>
    %202 = arith.cmpi sge, %200, %201 : vector<4x256xi32>
    %c1_i32_81 = arith.constant 1 : i32
    %203 = vector.broadcast %c1_i32_81 : i32 to vector<4x256xi32>
    %204 = arith.addi %18, %203 : vector<4x256xi32>
    %c16_i32_82 = arith.constant 16 : i32
    %205 = vector.broadcast %c16_i32_82 : i32 to vector<4x256xi32>
    %206 = arith.cmpi slt, %204, %205 : vector<4x256xi32>
    %207 = arith.andi %202, %206 : vector<4x256xi1>
    %cst_83 = arith.constant 0.000000e+00 : f32
    %208 = vector.broadcast %cst_83 : f32 to vector<4x256xf32>
    %209 = arith.select %207, %198, %208 : vector<4x256xi1>, vector<4x256xf32>
    %210 = vector.extract_strided_slice %0 {offsets = [2, 0, 0], sizes = [1, 4, 4], strides = [1, 1, 1]} : vector<9x4x4xf32> to vector<1x4x4xf32>
    %211 = vector.shape_cast %210 : vector<1x4x4xf32> to vector<4x4xf32>
    %cst_84 = arith.constant dense<0.000000e+00> : vector<4x256xf32>
    %212 = tpu.matmul %211, %209, %cst_84 {dimension_numbers = #tpu.dot_dimension_numbers<[1], [0], [0], [1], [0, 0, 1, 1], [], []>} : vector<4x4xf32>, vector<4x256xf32>, vector<4x256xf32> -> vector<4x256xf32>
    %213 = arith.addf %195, %212 : vector<4x256xf32>
    %cst_85 = arith.constant 0.000000e+00 : f32
    %214 = vector.broadcast %cst_85 : f32 to vector<4x1xf32>
    %215 = vector.extract_strided_slice %169 {offsets = [0, 0], sizes = [4, 255], strides = [1, 1]} : vector<4x256xf32> to vector<4x255xf32>
    %216 = tpu.concatenate %214, %215 in 1 : vector<4x1xf32>, vector<4x255xf32> -> vector<4x256xf32>
    %c-1_i32_86 = arith.constant -1 : i32
    %217 = vector.broadcast %c-1_i32_86 : i32 to vector<4x256xi32>
    %218 = arith.addi %18, %217 : vector<4x256xi32>
    %c0_i32_87 = arith.constant 0 : i32
    %219 = vector.broadcast %c0_i32_87 : i32 to vector<4x256xi32>
    %220 = arith.cmpi sge, %218, %219 : vector<4x256xi32>
    %c-1_i32_88 = arith.constant -1 : i32
    %221 = vector.broadcast %c-1_i32_88 : i32 to vector<4x256xi32>
    %222 = arith.addi %18, %221 : vector<4x256xi32>
    %c16_i32_89 = arith.constant 16 : i32
    %223 = vector.broadcast %c16_i32_89 : i32 to vector<4x256xi32>
    %224 = arith.cmpi slt, %222, %223 : vector<4x256xi32>
    %225 = arith.andi %220, %224 : vector<4x256xi1>
    %cst_90 = arith.constant 0.000000e+00 : f32
    %226 = vector.broadcast %cst_90 : f32 to vector<4x256xf32>
    %227 = arith.select %225, %216, %226 : vector<4x256xi1>, vector<4x256xf32>
    %228 = vector.extract_strided_slice %0 {offsets = [3, 0, 0], sizes = [1, 4, 4], strides = [1, 1, 1]} : vector<9x4x4xf32> to vector<1x4x4xf32>
    %229 = vector.shape_cast %228 : vector<1x4x4xf32> to vector<4x4xf32>
    %cst_91 = arith.constant dense<0.000000e+00> : vector<4x256xf32>
    %230 = tpu.matmul %229, %227, %cst_91 {dimension_numbers = #tpu.dot_dimension_numbers<[1], [0], [0], [1], [0, 0, 1, 1], [], []>} : vector<4x4xf32>, vector<4x256xf32>, vector<4x256xf32> -> vector<4x256xf32>
    %231 = arith.addf %213, %230 : vector<4x256xf32>
    %232 = vector.extract_strided_slice %0 {offsets = [4, 0, 0], sizes = [1, 4, 4], strides = [1, 1, 1]} : vector<9x4x4xf32> to vector<1x4x4xf32>
    %233 = vector.shape_cast %232 : vector<1x4x4xf32> to vector<4x4xf32>
    %cst_92 = arith.constant dense<0.000000e+00> : vector<4x256xf32>
    %234 = tpu.matmul %233, %169, %cst_92 {dimension_numbers = #tpu.dot_dimension_numbers<[1], [0], [0], [1], [0, 0, 1, 1], [], []>} : vector<4x4xf32>, vector<4x256xf32>, vector<4x256xf32> -> vector<4x256xf32>
    %235 = arith.addf %231, %234 : vector<4x256xf32>
    %cst_93 = arith.constant 0.000000e+00 : f32
    %236 = vector.broadcast %cst_93 : f32 to vector<4x1xf32>
    %237 = vector.extract_strided_slice %169 {offsets = [0, 1], sizes = [4, 255], strides = [1, 1]} : vector<4x256xf32> to vector<4x255xf32>
    %238 = tpu.concatenate %237, %236 in 1 : vector<4x255xf32>, vector<4x1xf32> -> vector<4x256xf32>
    %c1_i32_94 = arith.constant 1 : i32
    %239 = vector.broadcast %c1_i32_94 : i32 to vector<4x256xi32>
    %240 = arith.addi %18, %239 : vector<4x256xi32>
    %c0_i32_95 = arith.constant 0 : i32
    %241 = vector.broadcast %c0_i32_95 : i32 to vector<4x256xi32>
    %242 = arith.cmpi sge, %240, %241 : vector<4x256xi32>
    %c1_i32_96 = arith.constant 1 : i32
    %243 = vector.broadcast %c1_i32_96 : i32 to vector<4x256xi32>
    %244 = arith.addi %18, %243 : vector<4x256xi32>
    %c16_i32_97 = arith.constant 16 : i32
    %245 = vector.broadcast %c16_i32_97 : i32 to vector<4x256xi32>
    %246 = arith.cmpi slt, %244, %245 : vector<4x256xi32>
    %247 = arith.andi %242, %246 : vector<4x256xi1>
    %cst_98 = arith.constant 0.000000e+00 : f32
    %248 = vector.broadcast %cst_98 : f32 to vector<4x256xf32>
    %249 = arith.select %247, %238, %248 : vector<4x256xi1>, vector<4x256xf32>
    %250 = vector.extract_strided_slice %0 {offsets = [5, 0, 0], sizes = [1, 4, 4], strides = [1, 1, 1]} : vector<9x4x4xf32> to vector<1x4x4xf32>
    %251 = vector.shape_cast %250 : vector<1x4x4xf32> to vector<4x4xf32>
    %cst_99 = arith.constant dense<0.000000e+00> : vector<4x256xf32>
    %252 = tpu.matmul %251, %249, %cst_99 {dimension_numbers = #tpu.dot_dimension_numbers<[1], [0], [0], [1], [0, 0, 1, 1], [], []>} : vector<4x4xf32>, vector<4x256xf32>, vector<4x256xf32> -> vector<4x256xf32>
    %253 = arith.addf %235, %252 : vector<4x256xf32>
    %cst_100 = arith.constant 0.000000e+00 : f32
    %254 = vector.broadcast %cst_100 : f32 to vector<4x15xf32>
    %255 = vector.extract_strided_slice %169 {offsets = [0, 15], sizes = [4, 241], strides = [1, 1]} : vector<4x256xf32> to vector<4x241xf32>
    %256 = tpu.concatenate %255, %254 in 1 : vector<4x241xf32>, vector<4x15xf32> -> vector<4x256xf32>
    %c-1_i32_101 = arith.constant -1 : i32
    %257 = vector.broadcast %c-1_i32_101 : i32 to vector<4x256xi32>
    %258 = arith.addi %18, %257 : vector<4x256xi32>
    %c0_i32_102 = arith.constant 0 : i32
    %259 = vector.broadcast %c0_i32_102 : i32 to vector<4x256xi32>
    %260 = arith.cmpi sge, %258, %259 : vector<4x256xi32>
    %c-1_i32_103 = arith.constant -1 : i32
    %261 = vector.broadcast %c-1_i32_103 : i32 to vector<4x256xi32>
    %262 = arith.addi %18, %261 : vector<4x256xi32>
    %c16_i32_104 = arith.constant 16 : i32
    %263 = vector.broadcast %c16_i32_104 : i32 to vector<4x256xi32>
    %264 = arith.cmpi slt, %262, %263 : vector<4x256xi32>
    %265 = arith.andi %260, %264 : vector<4x256xi1>
    %cst_105 = arith.constant 0.000000e+00 : f32
    %266 = vector.broadcast %cst_105 : f32 to vector<4x256xf32>
    %267 = arith.select %265, %256, %266 : vector<4x256xi1>, vector<4x256xf32>
    %268 = vector.extract_strided_slice %0 {offsets = [6, 0, 0], sizes = [1, 4, 4], strides = [1, 1, 1]} : vector<9x4x4xf32> to vector<1x4x4xf32>
    %269 = vector.shape_cast %268 : vector<1x4x4xf32> to vector<4x4xf32>
    %cst_106 = arith.constant dense<0.000000e+00> : vector<4x256xf32>
    %270 = tpu.matmul %269, %267, %cst_106 {dimension_numbers = #tpu.dot_dimension_numbers<[1], [0], [0], [1], [0, 0, 1, 1], [], []>} : vector<4x4xf32>, vector<4x256xf32>, vector<4x256xf32> -> vector<4x256xf32>
    %271 = arith.addf %253, %270 : vector<4x256xf32>
    %cst_107 = arith.constant 0.000000e+00 : f32
    %272 = vector.broadcast %cst_107 : f32 to vector<4x16xf32>
    %273 = vector.extract_strided_slice %169 {offsets = [0, 16], sizes = [4, 240], strides = [1, 1]} : vector<4x256xf32> to vector<4x240xf32>
    %274 = tpu.concatenate %273, %272 in 1 : vector<4x240xf32>, vector<4x16xf32> -> vector<4x256xf32>
    %275 = vector.extract_strided_slice %0 {offsets = [7, 0, 0], sizes = [1, 4, 4], strides = [1, 1, 1]} : vector<9x4x4xf32> to vector<1x4x4xf32>
    %276 = vector.shape_cast %275 : vector<1x4x4xf32> to vector<4x4xf32>
    %cst_108 = arith.constant dense<0.000000e+00> : vector<4x256xf32>
    %277 = tpu.matmul %276, %274, %cst_108 {dimension_numbers = #tpu.dot_dimension_numbers<[1], [0], [0], [1], [0, 0, 1, 1], [], []>} : vector<4x4xf32>, vector<4x256xf32>, vector<4x256xf32> -> vector<4x256xf32>
    %278 = arith.addf %271, %277 : vector<4x256xf32>
    %cst_109 = arith.constant 0.000000e+00 : f32
    %279 = vector.broadcast %cst_109 : f32 to vector<4x17xf32>
    %280 = vector.extract_strided_slice %169 {offsets = [0, 17], sizes = [4, 239], strides = [1, 1]} : vector<4x256xf32> to vector<4x239xf32>
    %281 = tpu.concatenate %280, %279 in 1 : vector<4x239xf32>, vector<4x17xf32> -> vector<4x256xf32>
    %c1_i32_110 = arith.constant 1 : i32
    %282 = vector.broadcast %c1_i32_110 : i32 to vector<4x256xi32>
    %283 = arith.addi %18, %282 : vector<4x256xi32>
    %c0_i32_111 = arith.constant 0 : i32
    %284 = vector.broadcast %c0_i32_111 : i32 to vector<4x256xi32>
    %285 = arith.cmpi sge, %283, %284 : vector<4x256xi32>
    %c1_i32_112 = arith.constant 1 : i32
    %286 = vector.broadcast %c1_i32_112 : i32 to vector<4x256xi32>
    %287 = arith.addi %18, %286 : vector<4x256xi32>
    %c16_i32_113 = arith.constant 16 : i32
    %288 = vector.broadcast %c16_i32_113 : i32 to vector<4x256xi32>
    %289 = arith.cmpi slt, %287, %288 : vector<4x256xi32>
    %290 = arith.andi %285, %289 : vector<4x256xi1>
    %cst_114 = arith.constant 0.000000e+00 : f32
    %291 = vector.broadcast %cst_114 : f32 to vector<4x256xf32>
    %292 = arith.select %290, %281, %291 : vector<4x256xi1>, vector<4x256xf32>
    %293 = vector.extract_strided_slice %0 {offsets = [8, 0, 0], sizes = [1, 4, 4], strides = [1, 1, 1]} : vector<9x4x4xf32> to vector<1x4x4xf32>
    %294 = vector.shape_cast %293 : vector<1x4x4xf32> to vector<4x4xf32>
    %cst_115 = arith.constant dense<0.000000e+00> : vector<4x256xf32>
    %295 = tpu.matmul %294, %292, %cst_115 {dimension_numbers = #tpu.dot_dimension_numbers<[1], [0], [0], [1], [0, 0, 1, 1], [], []>} : vector<4x4xf32>, vector<4x256xf32>, vector<4x256xf32> -> vector<4x256xf32>
    %296 = arith.addf %278, %295 : vector<4x256xf32>
    %297 = vector.broadcast %1 : vector<4x1xf32> to vector<4x256xf32>
    %298 = arith.addf %296, %297 : vector<4x256xf32>
    %cst_116 = arith.constant dense<0.000000e+00> : vector<4x4xf32>
    %299 = tpu.matmul %298, %298, %cst_116 {dimension_numbers = #tpu.dot_dimension_numbers<[1], [1], [0], [0], [0, 0, 1, 0], [], []>} : vector<4x256xf32>, vector<4x256xf32>, vector<4x4xf32> -> vector<4x4xf32>
    %cst_117 = arith.constant dense<0xFF800000> : vector<4xf32>
    %300 = vector.multi_reduction <maximumf>, %299, %cst_117 [0] : vector<4x4xf32> to vector<4xf32>
    %301 = vector.shape_cast %300 : vector<4xf32> to vector<1x4xf32>
    %302 = vector.broadcast %301 : vector<1x4xf32> to vector<4x4xf32>
    %303 = arith.subf %299, %302 : vector<4x4xf32>
    %304 = math.exp %303 : vector<4x4xf32>
    %cst_118 = arith.constant dense<0.000000e+00> : vector<4xf32>
    %305 = vector.multi_reduction <add>, %304, %cst_118 [0] : vector<4x4xf32> to vector<4xf32>
    %306 = vector.shape_cast %305 : vector<4xf32> to vector<1x4xf32>
    %307 = tpu.reciprocal %306 {approx = true} : vector<1x4xf32> -> vector<1x4xf32>
    %308 = vector.broadcast %307 : vector<1x4xf32> to vector<4x4xf32>
    %309 = arith.mulf %304, %308 : vector<4x4xf32>
    %cst_119 = arith.constant dense<0.000000e+00> : vector<256x4xf32>
    %310 = tpu.matmul %298, %309, %cst_119 {dimension_numbers = #tpu.dot_dimension_numbers<[0], [0], [1], [1], [0, 1, 1, 1], [], []>} : vector<4x256xf32>, vector<4x4xf32>, vector<256x4xf32> -> vector<256x4xf32>
    %c1_120 = arith.constant 1 : index
    %c0_121 = arith.constant 0 : index
    %c0_122 = arith.constant 0 : index
    %311 = vector.load %arg4[%c1_120, %c0_121, %c0_122] : memref<2x256x4xf32, #tpu.memory_space<vmem>>, vector<1x256x4xf32>
    %312 = vector.shape_cast %311 : vector<1x256x4xf32> to vector<256x4xf32>
    %313 = vector.shape_cast %310 : vector<256x4xf32> to vector<1x256x4xf32>
    tpu.vector_store %arg4[%c1_120, %c0_121, %c0_122], %313 {strides = array<i32>} : memref<2x256x4xf32, #tpu.memory_space<vmem>>, vector<1x256x4xf32>,
    %c1_123 = arith.constant 1 : index
    %c0_124 = arith.constant 0 : index
    %c0_125 = arith.constant 0 : index
    %314 = vector.load %arg5[%c1_123, %c0_124, %c0_125] : memref<2x4x256xf32, #tpu.memory_space<vmem>>, vector<1x4x256xf32>
    %315 = vector.shape_cast %314 : vector<1x4x256xf32> to vector<4x256xf32>
    %316 = vector.shape_cast %298 : vector<4x256xf32> to vector<1x4x256xf32>
    tpu.vector_store %arg5[%c1_123, %c0_124, %c0_125], %316 {strides = array<i32>} : memref<2x4x256xf32, #tpu.memory_space<vmem>>, vector<1x4x256xf32>,
    return
  }
  func.func @transform_0(%arg0: i32) -> (i32, i32, i32) {
    %c0_i32 = arith.constant 0 : i32
    %c0_i32_0 = arith.constant 0 : i32
    %c0_i32_1 = arith.constant 0 : i32
    return %arg0, %c0_i32, %c0_i32_0 : i32, i32, i32
  }
  func.func @transform_1(%arg0: i32) -> (i32, i32, i32) {
    %c0_i32 = arith.constant 0 : i32
    %c0_i32_0 = arith.constant 0 : i32
    %c0_i32_1 = arith.constant 0 : i32
    %c0_i32_2 = arith.constant 0 : i32
    return %c0_i32, %c0_i32_0, %c0_i32_1 : i32, i32, i32
  }
  func.func @transform_2(%arg0: i32) -> (i32, i32) {
    %c0_i32 = arith.constant 0 : i32
    %c0_i32_0 = arith.constant 0 : i32
    %c0_i32_1 = arith.constant 0 : i32
    return %c0_i32, %c0_i32_0 : i32, i32
  }
  func.func @transform_3(%arg0: i32) -> (i32, i32, i32) {
    %c0_i32 = arith.constant 0 : i32
    %c0_i32_0 = arith.constant 0 : i32
    %c0_i32_1 = arith.constant 0 : i32
    return %arg0, %c0_i32, %c0_i32_0 : i32, i32, i32
  }
  func.func @transform_4(%arg0: i32) -> (i32, i32, i32) {
    %c0_i32 = arith.constant 0 : i32
    %c0_i32_0 = arith.constant 0 : i32
    %c0_i32_1 = arith.constant 0 : i32
    return %arg0, %c0_i32, %c0_i32_0 : i32, i32, i32
  }
}

</mosaic_0001>

<bundles_post_ra>
// kernel: tpu_custom_call.1
= control target key start
LH: loop header
LB: loop body
LE: loop exit
PB: predicated region body
PF: predicated region fallthrough
CT: control target
= control target key end

     0   :  { %s3129_s17 = smov 17   ;;  %s3130_s18 = smov 15   ;;  %v3131_v2 = vmov 0   ;;  %v3132_v3 = vmov 0.0   ;;  %s3825_s0 = inlined_call_operand.vmem [shape: f32[2,4,256], index: 0, kind: input, shape index: {}]   ;;  %s3826_s1 = inlined_call_operand.vmem [shape: f32[9,4,4], index: 1, kind: input, shape index: {}]   ;;  %s3827_s2 = inlined_call_operand.vmem [shape: f32[4,1], index: 2, kind: input, shape index: {}]   ;;  %s3828_s3 = inlined_call_operand.vmem [shape: f32[2,256,4], index: 3, kind: output, shape index: {0}]   ;;  %s3829_s4 = inlined_call_operand.hbm [shape: f32[2,4,256], index: 4, kind: output, shape index: {1}]  }
   0x1   :  { %v3170_v0 = vld [vmem:[%s3825_s0] sm:$0xff]  ;;  %3094 = vset.pattern.permute.xlu0 %v3131_v2  ;;  %238 = vmatprep.mubr.f32.mxu0 %v3132_v3 }
   0x2   :  { %57 = vrot.lane.b32.xlu0 %v3170_v0, %s3129_s17  ;;  %245 = vrot.lane.b32.xlu1 %v3170_v0, %s3130_s18  ;;  %v3178_v1 = vcombine.high %v3170_v0, %v3170_v0 }
   0x3   :  { %158 = vmatprep.mubr.f32.mxu1 %v3132_v3 }
   0x4   :  { %10 = vsyncpa [#allocation3], 0  ;;  %s3133_s19 = smov 1   ;;  %s3134_s20 = smov 127   ;;  %v26_v4 = vld [vmem:[%s3827_s2] sm:$0xf]  ;;  %v27_v7 = vlaneseq }
   0x5   :  { %s3135_s21 = smov 113   ;;  %s3136_s22 = smov 112   ;;  %v3204_v5 = vld [vmem:[%s3825_s0 + $0x8] sm:$0xff]  ;;  %vm61_vm0 = vcmask 138240   ;;  %vm249_vm1 = vcmask 121856   ;;  %vm88_vm4 = vcmask 1043456  }
   0x6   :  { %59 = vrot.lane.b32.xlu0 %v3178_v1, %s3129_s17  ;;  %247 = vrot.lane.b32.xlu1 %v3178_v1, %s3130_s18  ;;  %s3137_s23 = smov 111   ;;  %s3138_s24 = smov 16   ;;  %v3209_v6 = vcombine.high %v3204_v5, %v3204_v5  ;;  %v28_v8 = vand.u32 127, %v27_v7  ;;  %v3253_v26 = vld [vmem:[%s3826_s1] sm:$0xf]  ;;  %vm84_vm7 = vcmask 31744  }
   0x7   :  { %vm350_vm8 = vcmask 7168   ;;  %v3274_v36 = vld [vmem:[%s3826_s1 + $0x8] sm:$0xf]  ;;  %vm523_vm9 = vcmask 1039360   ;;  %v3288_v43 = vld [vmem:[%s3826_s1 + $0xc] sm:$0xf] }
   0x8   :  { %v29_v9 = vadd.s32 128, %v28_v8  ;;  %v34_v11 = vand.u32 15, %v28_v8  ;;  %vm80_vm10 = vcmask 130048   ;;  %vm616_vm11 = vcmask 924672   ;;  %v3305_v52 = vld [vmem:[%s3826_s1 + $0x4] sm:$0xf] }
   0x9   :  { %v3310_v53 = vld [vmem:[%s3826_s1 + $0x10] sm:$0xf]  ;;  %vm709_vm12 = vcmask 916480   ;;  %v3329_v59 = vld [vmem:[%s3826_s1 + $0x14] sm:$0xf]  ;;  %vm798_vm13 = vcmask 908288  }
   0xa   :  { %348 = vrot.lane.b32.xlu1 %v3178_v1, %s3133_s19  ;;  %346 = vrot.lane.b32.xlu0 %v3170_v0, %s3133_s19  ;;  %v41_v10 = vand.u32 15, %v29_v9  ;;  %v3234_v16 = vadd.s32 1, %v34_v11  ;;  %v3236_v17 = vadd.s32 4294967295, %v34_v11  ;;  %vm964_vm14 = vcmask 27648  }
   0xc   :  { %v3230_v12 = vadd.s32 1, %v41_v10  ;;  %v3232_v13 = vadd.s32 4294967295, %v41_v10  ;;  %vm258_vm5 = vcmp.lt.s32.totalorder %v3234_v16, 16  ;;  %vm68_vm6 = vcmp.ge.s32.totalorder %v3236_v17, 0 }
   0xe   :  { %521 = vrot.lane.b32.xlu0 %v3178_v1, %s3134_s20  ;;  %519 = vrot.lane.b32.xlu1 %v3170_v0, %s3134_s20  ;;  %vm259_vm2 = vcmp.lt.s32.totalorder %v3230_v12, 16  ;;  %vm69_vm3 = vcmp.ge.s32.totalorder %v3232_v13, 0 }
  0x12   :  { %614 = vrot.lane.b32.xlu0 %v3178_v1, %s3135_s21  ;;  %612 = vrot.lane.b32.xlu1 %v3170_v0, %s3135_s21 }
  0x16   :  { %707 = vrot.lane.b32.xlu0 %v3178_v1, %s3136_s22  ;;  %705 = vrot.lane.b32.xlu1 %v3170_v0, %s3136_s22 }
  0x1a   :  { %796 = vrot.lane.b32.xlu0 %v3178_v1, %s3137_s23  ;;  %76 = vrot.lane.b32.xlu1 %v3170_v0, %s3138_s24 }
  0x1e   :  { %78 = vrot.lane.b32.xlu0 %v3178_v1, %s3138_s24  ;;  %794 = vrot.lane.b32.xlu1 %v3170_v0, %s3137_s23 }
  0x22   :  { %889 = vperm.xlu0 %3094, %v26_v4   ;;  %1423 = vrot.lane.b32.xlu1 %v3204_v5, %s3138_s24 }
  0x26   :  { %1425 = vrot.lane.b32.xlu1 %v3209_v6, %s3138_s24  ;;  %1413 = vrot.lane.b32.xlu0 %v3204_v5, %s3129_s17  ;;  %s3139_s24 = smov [#allocation2]  }
  0x27   :  { %s2715_s25 = sshll.u32 %s3139_s24, 4  ;;  %s2716_s25 = int_to_ptr.vmem [resolvable:$true] %s2715_s25 }
  0x28   :  { %s3105_s26 = scalar_lea.vmem %s2716_s25, 256  ;;  %p3110_p1 = scmp.lt.s32.totalorder %s2716_s25, %s2716_s25 }
  0x29   :  { %p3106_p0 = scmp.ne.s32.totalorder %s2716_s25, %s3105_s26  ;;  %p3111_p2 = scmp.lt.s32.totalorder %s3105_s26, %s3105_s26 }
  0x2a   :  { %1415 = vrot.lane.b32.xlu1 %v3209_v6, %s3129_s17  ;;  %1583 = vrot.lane.b32.xlu0 %v3204_v5, %s3130_s18 }
  0x2b   :  { %p3112_p3 = por %p3111_p2, %p3110_p1 }
  0x2d   :  { %p3113_p4 = pnand %p3112_p3, %p3106_p0 }
  0x2e   :  { %1585 = vrot.lane.b32.xlu1 %v3209_v6, %s3130_s18  ;;  %1672 = vrot.lane.b32.xlu0 %v3204_v5, %s3133_s19 }
  0x32   :  { %1674 = vrot.lane.b32.xlu1 %v3209_v6, %s3133_s19  ;;  %1840 = vrot.lane.b32.xlu0 %v3209_v6, %s3134_s20 }
  0x36   :  { %1838 = vrot.lane.b32.xlu1 %v3204_v5, %s3134_s20  ;;  %1929 = vrot.lane.b32.xlu0 %v3209_v6, %s3135_s21 }
  0x3a   :  { %1927 = vrot.lane.b32.xlu1 %v3204_v5, %s3135_s21  ;;  %2018 = vrot.lane.b32.xlu0 %v3209_v6, %s3136_s22 }
  0x3e   :  { %2016 = vrot.lane.b32.xlu1 %v3204_v5, %s3136_s22  ;;  %2103 = vrot.lane.b32.xlu0 %v3209_v6, %s3137_s23 }
  0x42   :  { %2101 = vrot.lane.b32.xlu1 %v3204_v5, %s3137_s23 }
  0x74   :  { %v58_v14 = vpop.permute.xlu0 %57  ;;  %v246_v15 = vpop.permute.xlu1 %245 }
  0x75   :  { %v65_v18 = vsel %vm61_vm0, 0.0, %v58_v14  ;;  %v253_v19 = vsel %vm249_vm1, 0.0, %v246_v15 }
  0x76   :  { %v262_v27 = vsel %vm258_vm5, %v253_v19, 0.0  ;;  %v74_v28 = vsel %vm68_vm6, %v65_v18, 0.0 }
  0x78   :  { %v60_v20 = vpop.permute.xlu0 %59  ;;  %v248_v21 = vpop.permute.xlu1 %247 }
  0x79   :  { %v250_v22 = vsel %vm249_vm1, %v246_v15, %v248_v21  ;;  %v62_v23 = vsel %vm61_vm0, %v58_v14, %v60_v20  ;;  %v3359_v14 = vld [vmem:[%s3826_s1 + $0x1c] sm:$0xf] }
  0x7a   :  { %v263_v24 = vsel %vm259_vm2, %v250_v22, 0.0  ;;  %v75_v25 = vsel %vm69_vm3, %v62_v23, 0.0 }
  0x7b   :  { %2731 = vmatprep.subr.msk.mxu0 %vm88_vm4, %v75_v25  ;;  %v3376_v25 = vld [vmem:[%s3826_s1 + $0x20] sm:$0xf] }
  0x7c   :  { %2732 = vmatpush1.msk.msra.mxu0 %vm88_vm4, %v74_v28  ;;  %v349_v29 = vpop.permute.xlu1 %348  ;;  %v347_v30 = vpop.permute.xlu0 %346 }
  0x7d   :  { %2733 = vmatmul.mubr.msk.f32.vlgmr.msra.gmra.mrb[0].mxu0 %vm84_vm7, %v3253_v26  ;;  %2734 = vmatprep.subr.msk.mxu0 %vm88_vm4, %v263_v24  ;;  %v351_v31 = vsel %vm350_vm8, %v347_v30, %v349_v29  ;;  %v354_v33 = vsel %vm350_vm8, 0.0, %v347_v30 }
  0x7e   :  { %2735 = vmatpush1.msk.msra.mxu0 %vm88_vm4, %v262_v27  ;;  %337 = vmatprep.mubr.f32.mxu0 %v3132_v3  ;;  %v356_v32 = vsel %vm69_vm3, %v351_v31, 0.0  ;;  %v355_v37 = vsel %vm68_vm6, %v354_v33, 0.0 }
  0x7f   :  { %2737 = vmatprep.subr.msk.mxu0 %vm88_vm4, %v356_v32 }
  0x80   :  { %v522_v34 = vpop.permute.xlu0 %521  ;;  %v520_v35 = vpop.permute.xlu1 %519 }
  0x81   :  { %v527_v42 = vsel %vm523_vm9, %v522_v34, 0.0  ;;  %v524_v47 = vsel %vm523_vm9, %v520_v35, %v522_v34 }
  0x82   :  { %v529_v44 = vsel %vm259_vm2, %v527_v42, 0.0  ;;  %v528_v54 = vsel %vm258_vm5, %v524_v47, 0.0 }
  0x84   :  { %v615_v38 = vpop.permute.xlu0 %614  ;;  %v613_v39 = vpop.permute.xlu1 %612 }
  0x85   :  { %2736 = vmatmul.mubr.msk.f32.vlgmr.msra.gmra.mrb[0].mxu0 %vm84_vm7, %v3274_v36  ;;  %v620_v50 = vsel %vm616_vm11, %v615_v38, 0.0  ;;  %v617_v57 = vsel %vm616_vm11, %v613_v39, %v615_v38 }
  0x86   :  { %2738 = vmatpush1.msk.msra.mxu0 %vm88_vm4, %v355_v37  ;;  %430 = vmatprep.mubr.f32.mxu0 %v3132_v3  ;;  %v622_v56 = vsel %vm69_vm3, %v620_v50, 0.0  ;;  %v621_v60 = vsel %vm68_vm6, %v617_v57, 0.0 }
  0x87   :  { %2740 = vmatprep.subr.msk.mxu0 %vm88_vm4, %v3178_v1  ;;  %v3345_v1 = vld [vmem:[%s3826_s1 + $0x18] sm:$0xf] }
  0x88   :  { %v708_v40 = vpop.permute.xlu0 %707  ;;  %v706_v41 = vpop.permute.xlu1 %705 }
  0x89   :  { %v712_v61 = vsel %vm709_vm12, %v708_v40, 0.0  ;;  %v710_v2 = vsel %vm709_vm12, %v706_v41, %v708_v40 }
  0x8c   :  { %v797_v45 = vpop.permute.xlu0 %796  ;;  %v77_v46 = vpop.permute.xlu1 %76 }
  0x8d   :  { %2739 = vmatmul.mubr.msk.f32.vlgmr.msra.gmra.mrb[0].mxu0 %vm84_vm7, %v3288_v43  ;;  %v83_v49 = vsel %vm80_vm10, 0.0, %v77_v46  ;;  %v802_v63 = vsel %vm798_vm13, %v797_v45, 0.0 }
  0x8e   :  { %2741 = vmatpush1.msk.msra.mxu0 %vm88_vm4, %v3170_v0  ;;  %510 = vmatprep.mubr.f32.mxu0 %v3132_v3  ;;  %v804_v7 = vsel %vm259_vm2, %v802_v63, 0.0 }
  0x8f   :  { %2743 = vmatprep.subr.msk.mxu0 %vm88_vm4, %v529_v44 }
  0x90   :  { %v79_v48 = vpop.permute.xlu0 %78  ;;  %v795_v55 = vpop.permute.xlu1 %794 }
  0x91   :  { %v81_v51 = vsel %vm80_vm10, %v77_v46, %v79_v48  ;;  %v799_v10 = vsel %vm798_vm13, %v795_v55, %v797_v45 }
  0x92   :  { %2728 = vmatprep.subr.msk.mxu1 %vm88_vm4, %v81_v51  ;;  %v803_v15 = vsel %vm258_vm5, %v799_v10, 0.0 }
  0x93   :  { %2729 = vmatpush1.msk.msra.mxu1 %vm88_vm4, %v83_v49 }
  0x94   :  { %2730 = vmatmul.mubr.msk.f32.vlgmr.msra.gmra.mrb[0].mxu1 %vm84_vm7, %v3305_v52  ;;  %v1424_v58 = vpop.permute.xlu1 %1423 }
  0x95   :  { %2742 = vmatmul.mubr.msk.f32.vlgmr.msra.gmra.mrb[0].mxu0 %vm84_vm7, %v3310_v53  ;;  %v1429_v27 = vsel %vm80_vm10, 0.0, %v1424_v58 }
  0x96   :  { %2744 = vmatpush1.msk.msra.mxu0 %vm88_vm4, %v528_v54  ;;  %603 = vmatprep.mubr.f32.mxu0 %v3132_v3 }
  0x97   :  { %2746 = vmatprep.subr.msk.mxu0 %vm88_vm4, %v622_v56 }
  0x98   :  { %v1426_v62 = vpop.permute.xlu1 %1425 }
  0x99   :  { %v1427_v19 = vsel %vm80_vm10, %v1424_v58, %v1426_v62 }
  0x9c   :  { %v1416_v4 = vpop.permute.xlu1 %1415 }
  0x9d   :  { %2745 = vmatmul.mubr.msk.f32.vlgmr.msra.gmra.mrb[0].mxu0 %vm84_vm7, %v3329_v59 }
  0x9e   :  { %2747 = vmatpush1.msk.msra.mxu0 %vm88_vm4, %v621_v60  ;;  %696 = vmatprep.mubr.f32.mxu0 %v3132_v3 }
  0x9f   :  { %2749 = vmatprep.subr.msk.mxu0 %vm88_vm4, %v712_v61 }
  0xa0   :  { %v1586_v9 = vpop.permute.xlu1 %1585 }
  0xa1   :  { %v3340_v0 = vpop.permute.xlu0 %889 }
  0xa4   :  { %v1675_v18 = vpop.permute.xlu1 %1674 }
  0xa5   :  { %2748 = vmatmul.mubr.msk.f32.vlgmr.msra.gmra.mrb[0].mxu0 %vm84_vm7, %v3345_v1  ;;  %v1414_v8 = vpop.permute.xlu0 %1413 }
  0xa6   :  { %2750 = vmatpush1.msk.msra.mxu0 %vm88_vm4, %v710_v2  ;;  %785 = vmatprep.mubr.f32.mxu0 %v3132_v3  ;;  %v1417_v23 = vsel %vm61_vm0, %v1414_v8, %v1416_v4  ;;  %v1420_v28 = vsel %vm61_vm0, 0.0, %v1414_v8 }
  0xa7   :  { %2752 = vmatprep.subr.msk.mxu0 %vm88_vm4, %v804_v7  ;;  %v1422_v29 = vsel %vm69_vm3, %v1417_v23, 0.0  ;;  %v1421_v33 = vsel %vm68_vm6, %v1420_v28, 0.0 }
  0xa8   :  { %v1839_v41 = vpop.permute.xlu1 %1838 }
  0xa9   :  { %v1584_v11 = vpop.permute.xlu0 %1583 }
  0xaa   :  { %v1587_v30 = vsel %vm249_vm1, %v1584_v11, %v1586_v9  ;;  %v1590_v37 = vsel %vm249_vm1, 0.0, %v1584_v11 }
  0xab   :  { %v1592_v35 = vsel %vm259_vm2, %v1587_v30, 0.0  ;;  %v1591_v38 = vsel %vm258_vm5, %v1590_v37, 0.0 }
  0xac   :  { %v1928_v42 = vpop.permute.xlu1 %1927 }
  0xad   :  { %2751 = vmatmul.mubr.msk.f32.vlgmr.msra.gmra.mrb[0].mxu0 %vm84_vm7, %v3359_v14  ;;  %v1673_v20 = vpop.permute.xlu0 %1672 }
  0xae   :  { %2753 = vmatpush1.msk.msra.mxu0 %vm88_vm4, %v803_v15  ;;  %878 = vmatprep.mubr.f32.mxu0 %v3132_v3  ;;  %v1676_v21 = vsel %vm350_vm8, %v1673_v20, %v1675_v18  ;;  %v1679_v13 = vsel %vm350_vm8, 0.0, %v1673_v20 }
  0xaf   :  { %2789 = vmatprep.subr.msk.mxu0 %vm88_vm4, %v1427_v19  ;;  %v1681_v22 = vsel %vm69_vm3, %v1676_v21, 0.0  ;;  %v1680_v39 = vsel %vm68_vm6, %v1679_v13, 0.0 }
  0xb0   :  { %v2017_v47 = vpop.permute.xlu1 %2016 }
  0xb1   :  { %v1841_v24 = vpop.permute.xlu0 %1840 }
  0xb4   :  { %v2102_v50 = vpop.permute.xlu1 %2101 }
  0xb5   :  { %2754 = vmatmul.mubr.msk.f32.vlgmr.msra.gmra.mrb[0].mxu0 %vm84_vm7, %v3376_v25  ;;  %v1930_v31 = vpop.permute.xlu0 %1929 }
  0xb6   :  { %2790 = vmatpush1.msk.msra.mxu0 %vm88_vm4, %v1429_v27  ;;  %1499 = vmatprep.mubr.f32.mxu0 %v3132_v3  ;;  %v1934_v32 = vsel %vm616_vm11, %v1930_v31, 0.0 }
  0xb7   :  { %2792 = vmatprep.subr.msk.mxu0 %vm88_vm4, %v1422_v29  ;;  %v1936_v34 = vsel %vm69_vm3, %v1934_v32, 0.0 }
  0xb9   :  { %2791 = vmatmul.mubr.msk.f32.vlgmr.msra.gmra.mrb[2].mxu0 %vm84_vm7, %v3305_v52 }
  0xba   :  { %2793 = vmatpush1.msk.msra.mxu0 %vm88_vm4, %v1421_v33  ;;  %1576 = vmatprep.mubr.f32.mxu0 %v3132_v3 }
  0xbb   :  { %2795 = vmatprep.subr.msk.mxu0 %vm88_vm4, %v1592_v35 }
  0xc1   :  { %2794 = vmatmul.mubr.msk.f32.vlgmr.msra.gmra.mrb[2].mxu0 %vm84_vm7, %v3253_v26  ;;  %v1845_v26 = vsel %vm523_vm9, %v1841_v24, 0.0 }
  0xc2   :  { %2796 = vmatpush1.msk.msra.mxu0 %vm88_vm4, %v1591_v38  ;;  %1663 = vmatprep.mubr.f32.mxu0 %v3132_v3  ;;  %v1847_v40 = vsel %vm259_vm2, %v1845_v26, 0.0 }
  0xc3   :  { %2798 = vmatprep.subr.msk.mxu0 %vm88_vm4, %v1681_v22 }
  0xc9   :  { %2797 = vmatmul.mubr.msk.f32.vlgmr.msra.gmra.mrb[2].mxu0 %vm84_vm7, %v3274_v36  ;;  %v1842_v36 = vsel %vm523_vm9, %v1839_v41, %v1841_v24 }
  0xca   :  { %2799 = vmatpush1.msk.msra.mxu0 %vm88_vm4, %v1680_v39  ;;  %1752 = vmatprep.mubr.f32.mxu0 %v3132_v3 }
  0xcb   :  { %2801 = vmatprep.subr.msk.mxu0 %vm88_vm4, %v3209_v6  ;;  %v1846_v6 = vsel %vm258_vm5, %v1842_v36, 0.0 }
  0xd1   :  { %2800 = vmatmul.mubr.msk.f32.vlgmr.msra.gmra.mrb[2].mxu0 %vm84_vm7, %v3288_v43  ;;  %v2019_v43 = vpop.permute.xlu0 %2018 }
  0xd2   :  { %2802 = vmatpush1.msk.msra.mxu0 %vm88_vm4, %v3204_v5  ;;  %1829 = vmatprep.mubr.f32.mxu0 %v3132_v3  ;;  %v1931_v5 = vsel %vm616_vm11, %v1928_v42, %v1930_v31  ;;  %v2022_v45 = vsel %vm709_vm12, %v2019_v43, 0.0  ;;  %v2020_v49 = vsel %vm709_vm12, %v2017_v47, %v2019_v43 }
  0xd3   :  { %2804 = vmatprep.subr.msk.mxu0 %vm88_vm4, %v1847_v40  ;;  %v1935_v44 = vsel %vm68_vm6, %v1931_v5, 0.0 }
  0xd5   :  { %v2104_v46 = vpop.permute.xlu0 %2103 }
  0xd6   :  { %v2108_v48 = vsel %vm798_vm13, %v2104_v46, 0.0  ;;  %v2105_v51 = vsel %vm798_vm13, %v2102_v50, %v2104_v46 }
  0xd7   :  { %v2110_v17 = vsel %vm259_vm2, %v2108_v48, 0.0  ;;  %v2109_v52 = vsel %vm258_vm5, %v2105_v51, 0.0 }
  0xd9   :  { %2803 = vmatmul.mubr.msk.f32.vlgmr.msra.gmra.mrb[2].mxu0 %vm84_vm7, %v3310_v53 }
  0xda   :  { %2805 = vmatpush1.msk.msra.mxu0 %vm88_vm4, %v1846_v6  ;;  %1918 = vmatprep.mubr.f32.mxu0 %v3132_v3 }
  0xdb   :  { %2807 = vmatprep.subr.msk.mxu0 %vm88_vm4, %v1936_v34 }
  0xe1   :  { %2806 = vmatmul.mubr.msk.f32.vlgmr.msra.gmra.mrb[2].mxu0 %vm84_vm7, %v3329_v59 }
  0xe2   :  { %2808 = vmatpush1.msk.msra.mxu0 %vm88_vm4, %v1935_v44  ;;  %2007 = vmatprep.mubr.f32.mxu0 %v3132_v3 }
  0xe3   :  { %2810 = vmatprep.subr.msk.mxu0 %vm88_vm4, %v2022_v45 }
  0xe9   :  { %2809 = vmatmul.mubr.msk.f32.vlgmr.msra.gmra.mrb[2].mxu0 %vm84_vm7, %v3345_v1 }
  0xea   :  { %2811 = vmatpush1.msk.msra.mxu0 %vm88_vm4, %v2020_v49  ;;  %2092 = vmatprep.mubr.f32.mxu0 %v3132_v3 }
  0xeb   :  { %2813 = vmatprep.subr.msk.mxu0 %vm88_vm4, %v2110_v17 }
  0xf1   :  { %2812 = vmatmul.mubr.msk.f32.vlgmr.msra.gmra.mrb[2].mxu0 %vm84_vm7, %v3359_v14 }
  0xf2   :  { %2814 = vmatpush1.msk.msra.mxu0 %vm88_vm4, %v2109_v52  ;;  %2181 = vmatprep.mubr.f32.mxu0 %v3132_v3 }
  0xf9   :  { %2815 = vmatmul.mubr.msk.f32.vlgmr.msra.gmra.mrb[2].mxu0 %vm84_vm7, %v3376_v25 }
 0x167   :  { %v160_v12 = vpop.f32.mrb[0].mxu1 }
 0x168   :  { %v162_v53 = vpop.f32.mrb[1].mxu1 }
 0x188   :  { %v880_v54 = vpop.f32.mrb[0].mxu0 }
 0x189   :  { %v3049_v55 = vadd.f32 %v880_v54, %v160_v12  ;;  %v882_v56 = vpop.f32.mrb[1].mxu0 }
 0x18a   :  { %v3050_v57 = vadd.f32 %v882_v56, %v162_v53 }
 0x18b   :  { %v892_v58 = vadd.f32 %v3049_v55, %v3340_v0 }
 0x18c   :  { %v893_v16 = vadd.f32 %v3050_v57, %v3340_v0 }
 0x18d   :  { %984 = vxpose.xlu0.b32.start.end [1/1] (short) %v892_v58, 128 }
 0x18e   :  { %1016 = vxpose.xlu1.b32.start.end [1/1] (short) %v893_v16, 128  ;;  %894 = vmatprep.subr.mxu1 %v893_v16  ;;  %v1406_v59 = vcombine.low %v892_v58, %v893_v16 }
 0x18f   :  { %958 = vmatprep.mubr.f32.mxu1 %v893_v16  ;;  %895 = vmatpush1.xpose.msra.mxu1 %v892_v58 }
 0x190   :  { %1408 = vst [vmem:[#allocation2] sm:$0xff] %v1406_v59 }
 0x192   :  { %959 = vmatmul.mubr.f32.vlgmr.msra.gmra.mrb[2].mxu1 %v892_v58 }
 0x1cc   :  { %v2183_v3 = vpop.f32.mrb[2].mxu0 }
 0x1cd   :  { %v3464_v60 = vadd.f32 %v2183_v3, %v3340_v0  ;;  %v2185_v61 = vpop.f32.mrb[3].mxu0 }
 0x1ce   :  { %v3467_v62 = vadd.f32 %v2185_v61, %v3340_v0 }
 0x1cf   :  { %2281 = vxpose.xlu0.b32.start.end [1/1] (short) %v3464_v60, 128 }
 0x1d0   :  { %v2704_v63 = vcombine.low %v3464_v60, %v3467_v62  ;;  %2313 = vxpose.xlu1.b32.start.end [1/1] (short) %v3467_v62, 128 }
 0x1d2   :  { %2707 = vst [vmem:[#allocation2 + $0x8] sm:$0xff] %v2704_v63 }
 0x20d   :  { %v1000_v1 = vpop.trf.xlu0 }
 0x20e   :  { %2949 = vmatprep.mubr.msk.f32.mxu1 %vm84_vm7, %v1000_v1  ;;  %v1032_v24 = vpop.trf.xlu1 }
 0x211   :  { %v1001_v2 = vpop.trf.xlu0 }
 0x212   :  { %v1033_v30 = vpop.trf.xlu1 }
 0x215   :  { %v1002_v10 = vpop.trf.xlu0 }
 0x216   :  { %v1034_v35 = vpop.trf.xlu1 }
 0x219   :  { %v1003_v18 = vpop.trf.xlu0 }
 0x21a   :  { %v1035_v39 = vpop.trf.xlu1 }
 0x21d   :  { %v1004_v22 = vpop.trf.xlu0 }
 0x21e   :  { %v1036_v40 = vpop.trf.xlu1 }
 0x221   :  { %v1005_v23 = vpop.trf.xlu0 }
 0x222   :  { %v1037_v42 = vpop.trf.xlu1 }
 0x225   :  { %v1006_v27 = vpop.trf.xlu0 }
 0x226   :  { %v1038_v43 = vpop.trf.xlu1 }
 0x229   :  { %v1007_v33 = vpop.trf.xlu0 }
 0x22a   :  { %v1039_v45 = vpop.trf.xlu1 }
 0x22d   :  { %v1008_v13 = vpop.trf.xlu0 }
 0x22e   :  { %v1040_v47 = vpop.trf.xlu1 }
 0x231   :  { %v1009_v26 = vpop.trf.xlu0 }
 0x232   :  { %v1041_v49 = vpop.trf.xlu1 }
 0x235   :  { %v1010_v36 = vpop.trf.xlu0 }
 0x236   :  { %v1042_v50 = vpop.trf.xlu1 }
 0x239   :  { %v1011_v5 = vpop.trf.xlu0 }
 0x23a   :  { %v1043_v51 = vpop.trf.xlu1 }
 0x23d   :  { %v1012_v44 = vpop.trf.xlu0 }
 0x23e   :  { %v1044_v52 = vpop.trf.xlu1 }
 0x241   :  { %v1013_v46 = vpop.trf.xlu0 }
 0x242   :  { %v1045_v12 = vpop.trf.xlu1 }
 0x245   :  { %v1014_v48 = vpop.trf.xlu0 }
 0x246   :  { %v1046_v53 = vpop.trf.xlu1 }
 0x249   :  { %v1015_v17 = vpop.trf.xlu0 }
 0x24a   :  { %v1047_v54 = vpop.trf.xlu1 }
 0x24f   :  { %v2297_v55 = vpop.trf.xlu0 }
 0x250   :  { %2999 = vmatprep.mubr.msk.f32.mxu0 %vm84_vm7, %v2297_v55  ;;  %v3514_v56 = vpop.trf.xlu1 }
 0x254   :  { %v3516_v57 = vpop.trf.xlu1 }
 0x258   :  { %v2331_v58 = vpop.trf.xlu1 }
 0x265   :  { %v960_v4 = vpop.f32.mrb[2].mxu1 }
 0x266   :  { %v965_v7 = vsel %vm964_vm14, %v960_v4, -inf  ;;  %v962_v8 = vpop.f32.mrb[3].mxu1 }
 0x267   :  { %v966_v9 = vrot.slane %v965_v7, 4 }
 0x269   :  { %v967_v0 = vmax.f32 %v965_v7, %v966_v9 }
 0x26b   :  { %v968_v11 = vrot.slane %v967_v0, 2 }
 0x26d   :  { %v969_v14 = vmax.f32 %v967_v0, %v968_v11 }
 0x26f   :  { %v970_v15 = vrot.slane %v969_v14, 1 }
 0x271   :  { %v971_v19 = vmax.f32 %v969_v14, %v970_v15 }
 0x273   :  { %v972_v20 = vsub.f32 %v960_v4, %v971_v19 }
 0x275   :  { %v973_v21 = vmul.f32 1.442695, %v972_v20 }
 0x277   :  { %3097 = vpow2.f32 %v973_v21 }
 0x281   :  { %v3098_v25 = vpop.eup %3097 }
 0x282   :  { %v975_v28 = vsel %vm964_vm14, %v3098_v25, 0.0 }
 0x283   :  { %v976_v29 = vrot.slane %v975_v28, 4 }
 0x285   :  { %v977_v31 = vadd.f32 %v976_v29, %v975_v28 }
 0x287   :  { %v978_v32 = vrot.slane %v977_v31, 2 }
 0x289   :  { %v979_v34 = vadd.f32 %v978_v32, %v977_v31 }
 0x28b   :  { %v980_v37 = vrot.slane %v979_v34, 1 }
 0x28d   :  { %v981_v38 = vadd.f32 %v980_v37, %v979_v34 }
 0x28f   :  { %3099 = vrcp.f32 %v981_v38 }
 0x299   :  { %v3100_v41 = vpop.eup %3099 }
 0x29a   :  { %v983_v6 = vmul.f32 %v3100_v41, %v3098_v25 }
 0x29c   :  { %2947 = vmatprep.subr.msk.mxu1 %vm88_vm4, %v983_v6 }
 0x29d   :  { %2948 = vmatpush3.msk.msra.mxu1 %vm88_vm4, %v983_v6 }
 0x29e   :  { %2950 = vmatmul.mubr.msk.f32.vlgmr.msra.gmra.mrb[4].mxu1 %vm84_vm7, %v1001_v2  ;;  %2192 = vmatprep.subr.mxu1 %v3467_v62 }
 0x29f   :  { %2952 = vmatprep.mubr.msk.f32.mxu1 %vm84_vm7, %v1002_v10 }
 0x2a2   :  { %2953 = vmatmul.mubr.msk.f32.gmra.mrb[6].mxu1 %vm84_vm7, %v1003_v18 }
 0x2a3   :  { %2955 = vmatprep.mubr.msk.f32.mxu1 %vm84_vm7, %v1004_v22 }
 0x2a4   :  { %2193 = vmatpush1.xpose.msra.mxu1 %v3464_v60 }
 0x2a6   :  { %2956 = vmatmul.mubr.msk.f32.gmra.mrb[8].mxu1 %vm84_vm7, %v1005_v23 }
 0x2a7   :  { %2958 = vmatprep.mubr.msk.f32.mxu1 %vm84_vm7, %v1006_v27 }
 0x2aa   :  { %2959 = vmatmul.mubr.msk.f32.gmra.mrb[10].mxu1 %vm84_vm7, %v1007_v33  ;;  %v2298_v33 = vpop.trf.xlu0 }
 0x2ab   :  { %2961 = vmatprep.mubr.msk.f32.mxu1 %vm84_vm7, %v1008_v13 }
 0x2ae   :  { %2962 = vmatmul.mubr.msk.f32.gmra.mrb[12].mxu1 %vm84_vm7, %v1009_v26 }
 0x2af   :  { %2964 = vmatprep.mubr.msk.f32.mxu1 %vm84_vm7, %v1010_v36 }
 0x2b2   :  { %2965 = vmatmul.mubr.msk.f32.gmra.mrb[14].mxu1 %vm84_vm7, %v1011_v5 }
 0x2b3   :  { %2967 = vmatprep.mubr.msk.f32.mxu1 %vm84_vm7, %v1012_v44 }
 0x2b6   :  { %2968 = vmatmul.mubr.msk.f32.gmra.mrb[16].mxu1 %vm84_vm7, %v1013_v46 }
 0x2b7   :  { %2970 = vmatprep.mubr.msk.f32.mxu1 %vm84_vm7, %v1014_v48 }
 0x2ba   :  { %2971 = vmatmul.mubr.msk.f32.gmra.mrb[18].mxu1 %vm84_vm7, %v1015_v17 }
 0x2bb   :  { %2973 = vmatprep.mubr.msk.f32.mxu1 %vm84_vm7, %v1032_v24 }
 0x2be   :  { %2974 = vmatmul.mubr.msk.f32.gmra.mrb[20].mxu1 %vm84_vm7, %v1033_v30 }
 0x2bf   :  { %2976 = vmatprep.mubr.msk.f32.mxu1 %vm84_vm7, %v1034_v35 }
 0x2c2   :  { %2977 = vmatmul.mubr.msk.f32.gmra.mrb[22].mxu1 %vm84_vm7, %v1035_v39  ;;  %v2299_v39 = vpop.trf.xlu0 }
 0x2c3   :  { %2979 = vmatprep.mubr.msk.f32.mxu1 %vm84_vm7, %v1036_v40  ;;  %v2332_v40 = vpop.trf.xlu1 }
 0x2c6   :  { %2980 = vmatmul.mubr.msk.f32.gmra.mrb[24].mxu1 %vm84_vm7, %v1037_v42  ;;  %v2300_v6 = vpop.trf.xlu0 }
 0x2c7   :  { %2982 = vmatprep.mubr.msk.f32.mxu1 %vm84_vm7, %v1038_v43  ;;  %v2333_v5 = vpop.trf.xlu1 }
 0x2ca   :  { %2983 = vmatmul.mubr.msk.f32.gmra.mrb[26].mxu1 %vm84_vm7, %v1039_v45  ;;  %v2301_v45 = vpop.trf.xlu0 }
 0x2cb   :  { %2985 = vmatprep.mubr.msk.f32.mxu1 %vm84_vm7, %v1040_v47  ;;  %v2334_v46 = vpop.trf.xlu1 }
 0x2ce   :  { %2986 = vmatmul.mubr.msk.f32.gmra.mrb[28].mxu1 %vm84_vm7, %v1041_v49  ;;  %v2302_v47 = vpop.trf.xlu0 }
 0x2cf   :  { %2988 = vmatprep.mubr.msk.f32.mxu1 %vm84_vm7, %v1042_v50  ;;  %v2335_v48 = vpop.trf.xlu1 }
 0x2d2   :  { %2989 = vmatmul.mubr.msk.f32.gmra.mrb[30].mxu1 %vm84_vm7, %v1043_v51  ;;  %v2303_v17 = vpop.trf.xlu0 }
 0x2d3   :  { %2991 = vmatprep.mubr.msk.f32.mxu1 %vm84_vm7, %v1044_v52  ;;  %v2336_v52 = vpop.trf.xlu1 }
 0x2d6   :  { %2992 = vmatmul.mubr.msk.f32.gmra.mrb[32].mxu1 %vm84_vm7, %v1045_v12 }
 0x2d7   :  { %2994 = vmatprep.mubr.msk.f32.mxu1 %vm84_vm7, %v1046_v53 }
 0x2da   :  { %2995 = vmatmul.mubr.msk.f32.gmra.mrb[34].mxu1 %vm84_vm7, %v1047_v54  ;;  %v2304_v54 = vpop.trf.xlu0 }
 0x2db   :  { %2256 = vmatprep.mubr.f32.mxu1 %v3467_v62 }
 0x2de   :  { %2257 = vmatmul.mubr.f32.vlgmr.msra.gmra.mrb[36].mxu1 %v3464_v60 }
 0x2df   :  { %3026 = vmatprep.mubr.msk.f32.mxu1 %vm84_vm7, %v2331_v58  ;;  %v2337_v58 = vpop.trf.xlu1 }
 0x371   :  { %v2951_v16 = vpop.f32.mrb[4].mxu1 }
 0x372   :  { %1373 = vst.msk [vmem:[%s3828_s3 + $0x8] sm:$0xff] %vm84_vm7, %v2951_v16  ;;  %v1213_v59 = vpop.f32.mrb[5].mxu1 }
 0x373   :  { %1372 = vst.msk [vmem:[%s3828_s3] sm:$0xff] %vm84_vm7, %v1213_v59 }
 0x375   :  { %v2954_v3 = vpop.f32.mrb[6].mxu1 }
 0x376   :  { %1375 = vst.msk [vmem:[%s3828_s3 + $0x18] sm:$0xff] %vm84_vm7, %v2954_v3  ;;  %v1223_v60 = vpop.f32.mrb[7].mxu1  ;;  %v2305_v3 = vpop.trf.xlu0 }
 0x377   :  { %1374 = vst.msk [vmem:[%s3828_s3 + $0x10] sm:$0xff] %vm84_vm7, %v1223_v60  ;;  %v2338_v60 = vpop.trf.xlu1 }
 0x379   :  { %v2957_v61 = vpop.f32.mrb[8].mxu1 }
 0x37a   :  { %1377 = vst.msk [vmem:[%s3828_s3 + $0x28] sm:$0xff] %vm84_vm7, %v2957_v61  ;;  %v1233_v62 = vpop.f32.mrb[9].mxu1  ;;  %v2306_v61 = vpop.trf.xlu0 }
 0x37b   :  { %1376 = vst.msk [vmem:[%s3828_s3 + $0x20] sm:$0xff] %vm84_vm7, %v1233_v62  ;;  %v2339_v62 = vpop.trf.xlu1 }
 0x37d   :  { %v2960_v63 = vpop.f32.mrb[10].mxu1 }
 0x37e   :  { %1379 = vst.msk [vmem:[%s3828_s3 + $0x38] sm:$0xff] %vm84_vm7, %v2960_v63  ;;  %v1243_v1 = vpop.f32.mrb[11].mxu1 }
 0x37f   :  { %1378 = vst.msk [vmem:[%s3828_s3 + $0x30] sm:$0xff] %vm84_vm7, %v1243_v1  ;;  %v2307_v1 = vpop.trf.xlu0 }
 0x381   :  { %v2963_v2 = vpop.f32.mrb[12].mxu1 }
 0x382   :  { %1381 = vst.msk [vmem:[%s3828_s3 + $0x48] sm:$0xff] %vm84_vm7, %v2963_v2  ;;  %v1253_v4 = vpop.f32.mrb[13].mxu1 }
 0x383   :  { %1380 = vst.msk [vmem:[%s3828_s3 + $0x40] sm:$0xff] %vm84_vm7, %v1253_v4  ;;  %v2340_v4 = vpop.trf.xlu1 }
 0x385   :  { %v2966_v7 = vpop.f32.mrb[14].mxu1 }
 0x386   :  { %1383 = vst.msk [vmem:[%s3828_s3 + $0x58] sm:$0xff] %vm84_vm7, %v2966_v7  ;;  %v1263_v8 = vpop.f32.mrb[15].mxu1  ;;  %v2308_v7 = vpop.trf.xlu0 }
 0x387   :  { %1382 = vst.msk [vmem:[%s3828_s3 + $0x50] sm:$0xff] %vm84_vm7, %v1263_v8  ;;  %v2341_v8 = vpop.trf.xlu1 }
 0x389   :  { %v2969_v9 = vpop.f32.mrb[16].mxu1 }
 0x38a   :  { %1385 = vst.msk [vmem:[%s3828_s3 + $0x68] sm:$0xff] %vm84_vm7, %v2969_v9  ;;  %v1273_v0 = vpop.f32.mrb[17].mxu1  ;;  %v2309_v9 = vpop.trf.xlu0 }
 0x38b   :  { %1384 = vst.msk [vmem:[%s3828_s3 + $0x60] sm:$0xff] %vm84_vm7, %v1273_v0  ;;  %v2342_v0 = vpop.trf.xlu1 }
 0x38d   :  { %v2972_v10 = vpop.f32.mrb[18].mxu1 }
 0x38e   :  { %1387 = vst.msk [vmem:[%s3828_s3 + $0x78] sm:$0xff] %vm84_vm7, %v2972_v10  ;;  %v1283_v11 = vpop.f32.mrb[19].mxu1  ;;  %v2310_v10 = vpop.trf.xlu0 }
 0x38f   :  { %1386 = vst.msk [vmem:[%s3828_s3 + $0x70] sm:$0xff] %vm84_vm7, %v1283_v11  ;;  %v2343_v11 = vpop.trf.xlu1 }
 0x391   :  { %v2975_v14 = vpop.f32.mrb[20].mxu1 }
 0x392   :  { %1389 = vst.msk [vmem:[%s3828_s3 + $0x88] sm:$0xff] %vm84_vm7, %v2975_v14  ;;  %v1293_v15 = vpop.f32.mrb[21].mxu1  ;;  %v2311_v14 = vpop.trf.xlu0 }
 0x393   :  { %1388 = vst.msk [vmem:[%s3828_s3 + $0x80] sm:$0xff] %vm84_vm7, %v1293_v15  ;;  %v2344_v15 = vpop.trf.xlu1 }
 0x395   :  { %v2978_v18 = vpop.f32.mrb[22].mxu1 }
 0x396   :  { %1391 = vst.msk [vmem:[%s3828_s3 + $0x98] sm:$0xff] %vm84_vm7, %v2978_v18  ;;  %v1303_v19 = vpop.f32.mrb[23].mxu1  ;;  %v2312_v18 = vpop.trf.xlu0 }
 0x397   :  { %1390 = vst.msk [vmem:[%s3828_s3 + $0x90] sm:$0xff] %vm84_vm7, %v1303_v19 }
 0x399   :  { %v2981_v20 = vpop.f32.mrb[24].mxu1 }
 0x39a   :  { %1393 = vst.msk [vmem:[%s3828_s3 + $0xa8] sm:$0xff] %vm84_vm7, %v2981_v20  ;;  %v1313_v21 = vpop.f32.mrb[25].mxu1 }
 0x39b   :  { %1392 = vst.msk [vmem:[%s3828_s3 + $0xa0] sm:$0xff] %vm84_vm7, %v1313_v21 }
 0x39d   :  { %v2984_v22 = vpop.f32.mrb[26].mxu1 }
 0x39e   :  { %1395 = vst.msk [vmem:[%s3828_s3 + $0xb8] sm:$0xff] %vm84_vm7, %v2984_v22  ;;  %v1323_v23 = vpop.f32.mrb[27].mxu1 }
 0x39f   :  { %1394 = vst.msk [vmem:[%s3828_s3 + $0xb0] sm:$0xff] %vm84_vm7, %v1323_v23 }
 0x3a1   :  { %v2987_v24 = vpop.f32.mrb[28].mxu1 }
 0x3a2   :  { %1397 = vst.msk [vmem:[%s3828_s3 + $0xc8] sm:$0xff] %vm84_vm7, %v2987_v24  ;;  %v1333_v25 = vpop.f32.mrb[29].mxu1 }
 0x3a3   :  { %1396 = vst.msk [vmem:[%s3828_s3 + $0xc0] sm:$0xff] %vm84_vm7, %v1333_v25 }
 0x3a5   :  { %v2990_v27 = vpop.f32.mrb[30].mxu1 }
 0x3a6   :  { %1399 = vst.msk [vmem:[%s3828_s3 + $0xd8] sm:$0xff] %vm84_vm7, %v2990_v27  ;;  %v1343_v28 = vpop.f32.mrb[31].mxu1 }
 0x3a7   :  { %1398 = vst.msk [vmem:[%s3828_s3 + $0xd0] sm:$0xff] %vm84_vm7, %v1343_v28 }
 0x3a9   :  { %v2993_v29 = vpop.f32.mrb[32].mxu1 }
 0x3aa   :  { %1401 = vst.msk [vmem:[%s3828_s3 + $0xe8] sm:$0xff] %vm84_vm7, %v2993_v29  ;;  %v1353_v30 = vpop.f32.mrb[33].mxu1 }
 0x3ab   :  { %1400 = vst.msk [vmem:[%s3828_s3 + $0xe0] sm:$0xff] %vm84_vm7, %v1353_v30 }
 0x3ad   :  { %v2996_v31 = vpop.f32.mrb[34].mxu1 }
 0x3ae   :  { %1403 = vst.msk [vmem:[%s3828_s3 + $0xf8] sm:$0xff] %vm84_vm7, %v2996_v31  ;;  %v1363_v32 = vpop.f32.mrb[35].mxu1 }
 0x3af   :  { %1402 = vst.msk [vmem:[%s3828_s3 + $0xf0] sm:$0xff] %vm84_vm7, %v1363_v32 }
 0x3b1   :  { %v2258_v34 = vpop.f32.mrb[36].mxu1 }
 0x3b2   :  { %v2262_v35 = vsel %vm964_vm14, %v2258_v34, -inf  ;;  %v2260_v37 = vpop.f32.mrb[37].mxu1 }
 0x3b3   :  { %v2263_v38 = vrot.slane %v2262_v35, 4 }
 0x3b5   :  { %v2264_v13 = vmax.f32 %v2262_v35, %v2263_v38 }
 0x3b7   :  { %v2265_v26 = vrot.slane %v2264_v13, 2 }
 0x3b9   :  { %v2266_v41 = vmax.f32 %v2264_v13, %v2265_v26 }
 0x3bb   :  { %v2267_v36 = vrot.slane %v2266_v41, 1 }
 0x3bd   :  { %v2268_v42 = vmax.f32 %v2266_v41, %v2267_v36 }
 0x3bf   :  { %v2269_v43 = vsub.f32 %v2258_v34, %v2268_v42 }
 0x3c1   :  { %v2270_v44 = vmul.f32 1.442695, %v2269_v43 }
 0x3c3   :  { %3101 = vpow2.f32 %v2270_v44 }
 0x3cd   :  { %v3102_v49 = vpop.eup %3101 }
 0x3ce   :  { %v2272_v50 = vsel %vm964_vm14, %v3102_v49, 0.0 }
 0x3cf   :  { %v2273_v51 = vrot.slane %v2272_v50, 4 }
 0x3d1   :  { %v2274_v12 = vadd.f32 %v2273_v51, %v2272_v50 }
 0x3d3   :  { %v2275_v53 = vrot.slane %v2274_v12, 2 }
 0x3d5   :  { %v2276_v55 = vadd.f32 %v2275_v53, %v2274_v12 }
 0x3d7   :  { %v2277_v16 = vrot.slane %v2276_v55, 1 }
 0x3d9   :  { %v2278_v59 = vadd.f32 %v2277_v16, %v2276_v55 }
 0x3db   :  { %3103 = vrcp.f32 %v2278_v59 }
 0x3e5   :  { %v3104_v63 = vpop.eup %3103 }
 0x3e6   :  { %v2280_v2 = vmul.f32 %v3104_v63, %v3102_v49 }
 0x3e8   :  { %2997 = vmatprep.subr.msk.mxu0 %vm88_vm4, %v2280_v2  ;;  %3047 = vmatprep.subr.msk.mxu1 %vm88_vm4, %v2280_v2 }
 0x3e9   :  { %2998 = vmatpush3.msk.msra.mxu0 %vm88_vm4, %v2280_v2  ;;  %3048 = vmatpush3.msk.msra.mxu1 %vm88_vm4, %v2280_v2 }
 0x3ea   :  { %3000 = vmatmul.mubr.msk.f32.vlgmr.msra.gmra.mrb[4].mxu0 %vm84_vm7, %v2298_v33  ;;  %3027 = vmatmul.mubr.msk.f32.vlgmr.msra.gmra.mrb[38].mxu1 %vm84_vm7, %v2332_v40 }
 0x3eb   :  { %3002 = vmatprep.mubr.msk.f32.mxu0 %vm84_vm7, %v2299_v39  ;;  %3029 = vmatprep.mubr.msk.f32.mxu1 %vm84_vm7, %v2333_v5 }
 0x3ee   :  { %3003 = vmatmul.mubr.msk.f32.gmra.mrb[6].mxu0 %vm84_vm7, %v2300_v6  ;;  %3030 = vmatmul.mubr.msk.f32.gmra.mrb[40].mxu1 %vm84_vm7, %v2334_v46 }
 0x3ef   :  { %3005 = vmatprep.mubr.msk.f32.mxu0 %vm84_vm7, %v2301_v45  ;;  %3032 = vmatprep.mubr.msk.f32.mxu1 %vm84_vm7, %v2335_v48 }
 0x3f2   :  { %3006 = vmatmul.mubr.msk.f32.gmra.mrb[8].mxu0 %vm84_vm7, %v2302_v47  ;;  %3033 = vmatmul.mubr.msk.f32.gmra.mrb[42].mxu1 %vm84_vm7, %v2336_v52 }
 0x3f3   :  { %3008 = vmatprep.mubr.msk.f32.mxu0 %vm84_vm7, %v2303_v17  ;;  %3035 = vmatprep.mubr.msk.f32.mxu1 %vm84_vm7, %v2337_v58 }
 0x3f6   :  { %3009 = vmatmul.mubr.msk.f32.gmra.mrb[10].mxu0 %vm84_vm7, %v2304_v54  ;;  %3036 = vmatmul.mubr.msk.f32.gmra.mrb[44].mxu1 %vm84_vm7, %v2338_v60 }
 0x3f7   :  { %3011 = vmatprep.mubr.msk.f32.mxu0 %vm84_vm7, %v2305_v3  ;;  %3038 = vmatprep.mubr.msk.f32.mxu1 %vm84_vm7, %v2339_v62 }
 0x3fa   :  { %3012 = vmatmul.mubr.msk.f32.gmra.mrb[12].mxu0 %vm84_vm7, %v2306_v61  ;;  %3039 = vmatmul.mubr.msk.f32.gmra.mrb[46].mxu1 %vm84_vm7, %v2340_v4 }
 0x3fb   :  { %3014 = vmatprep.mubr.msk.f32.mxu0 %vm84_vm7, %v2307_v1  ;;  %3041 = vmatprep.mubr.msk.f32.mxu1 %vm84_vm7, %v2341_v8 }
 0x3fe   :  { %3015 = vmatmul.mubr.msk.f32.gmra.mrb[14].mxu0 %vm84_vm7, %v2308_v7  ;;  %3042 = vmatmul.mubr.msk.f32.gmra.mrb[48].mxu1 %vm84_vm7, %v2342_v0 }
 0x3ff   :  { %3017 = vmatprep.mubr.msk.f32.mxu0 %vm84_vm7, %v2309_v9  ;;  %3044 = vmatprep.mubr.msk.f32.mxu1 %vm84_vm7, %v2343_v11 }
 0x402   :  { %3018 = vmatmul.mubr.msk.f32.gmra.mrb[16].mxu0 %vm84_vm7, %v2310_v10  ;;  %3045 = vmatmul.mubr.msk.f32.gmra.mrb[50].mxu1 %vm84_vm7, %v2344_v15 }
 0x403   :  { %3020 = vmatprep.mubr.msk.f32.mxu0 %vm84_vm7, %v2311_v14 }
 0x406   :  { %3021 = vmatmul.mubr.msk.f32.gmra.mrb[18].mxu0 %vm84_vm7, %v2312_v18 }
 0x407   :  { %3023 = vmatprep.mubr.msk.f32.mxu0 %vm84_vm7, %v3514_v56 }
 0x40a   :  { %3024 = vmatmul.mubr.msk.f32.gmra.mrb[20].mxu0 %vm84_vm7, %v3516_v57 }
 0x40b   :  { %3116 = shalt.err (!%p3113_p4)
}
 0x40c   :  { %s3117_s0 = scalar_lea.hbm %s3829_s4, 256 }
 0x40d   :  { %p3118_p5 = scmp.ne.s32.totalorder %s3829_s4, %s3117_s0  ;;  %p3121_p6 = scmp.lt.u32.totalorder %s3117_s0, %s3829_s4 }
 0x40f   :  { %p3123_p7 = pnand %p3121_p6, %p3118_p5 }
 0x411   :  { %3126 = shalt.err (!%p3123_p7)
}
 0x412   :  { %s3140_s6 = smov 128   ;;  %s3141_s7 = smov 8  }
 0x413   :  { %2721 = dma.vmem_to_hbm [thread:$0]  %s2716_s25, 256, %s3829_s4, [#allocation3], %s3140_s6, %s3140_s6, %s3141_s7  }
 0x4bd   :  { %v3001_v56 = vpop.f32.mrb[4].mxu0  ;;  %v3028_v57 = vpop.f32.mrb[38].mxu1 }
 0x4be   :  { %2850 = vst.msk [vmem:[%s3828_s3 + $0x108] sm:$0xff] %vm84_vm7, %v3001_v56  ;;  %2868 = vst.msk [vmem:[%s3828_s3 + $0x198] sm:$0xff] %vm84_vm7, %v3028_v57  ;;  %v2510_v19 = vpop.f32.mrb[5].mxu0  ;;  %v2600_v20 = vpop.f32.mrb[39].mxu1 }
 0x4bf   :  { %2849 = vst.msk [vmem:[%s3828_s3 + $0x100] sm:$0xff] %vm84_vm7, %v2510_v19  ;;  %2867 = vst.msk [vmem:[%s3828_s3 + $0x190] sm:$0xff] %vm84_vm7, %v2600_v20 }
 0x4c1   :  { %v3004_v21 = vpop.f32.mrb[6].mxu0  ;;  %v3031_v22 = vpop.f32.mrb[40].mxu1 }
 0x4c2   :  { %2852 = vst.msk [vmem:[%s3828_s3 + $0x118] sm:$0xff] %vm84_vm7, %v3004_v21  ;;  %2870 = vst.msk [vmem:[%s3828_s3 + $0x1a8] sm:$0xff] %vm84_vm7, %v3031_v22  ;;  %v2520_v23 = vpop.f32.mrb[7].mxu0  ;;  %v2610_v24 = vpop.f32.mrb[41].mxu1 }
 0x4c3   :  { %2851 = vst.msk [vmem:[%s3828_s3 + $0x110] sm:$0xff] %vm84_vm7, %v2520_v23  ;;  %2869 = vst.msk [vmem:[%s3828_s3 + $0x1a0] sm:$0xff] %vm84_vm7, %v2610_v24 }
 0x4c5   :  { %v3007_v25 = vpop.f32.mrb[8].mxu0  ;;  %v3034_v27 = vpop.f32.mrb[42].mxu1 }
 0x4c6   :  { %2854 = vst.msk [vmem:[%s3828_s3 + $0x128] sm:$0xff] %vm84_vm7, %v3007_v25  ;;  %2872 = vst.msk [vmem:[%s3828_s3 + $0x1b8] sm:$0xff] %vm84_vm7, %v3034_v27  ;;  %v2530_v28 = vpop.f32.mrb[9].mxu0  ;;  %v2620_v29 = vpop.f32.mrb[43].mxu1 }
 0x4c7   :  { %2853 = vst.msk [vmem:[%s3828_s3 + $0x120] sm:$0xff] %vm84_vm7, %v2530_v28  ;;  %2871 = vst.msk [vmem:[%s3828_s3 + $0x1b0] sm:$0xff] %vm84_vm7, %v2620_v29 }
 0x4c9   :  { %v3010_v30 = vpop.f32.mrb[10].mxu0  ;;  %v3037_v31 = vpop.f32.mrb[44].mxu1 }
 0x4ca   :  { %2856 = vst.msk [vmem:[%s3828_s3 + $0x138] sm:$0xff] %vm84_vm7, %v3010_v30  ;;  %v2540_v32 = vpop.f32.mrb[11].mxu0  ;;  %2874 = vst.msk [vmem:[%s3828_s3 + $0x1c8] sm:$0xff] %vm84_vm7, %v3037_v31  ;;  %v2630_v33 = vpop.f32.mrb[45].mxu1 }
 0x4cb   :  { %2855 = vst.msk [vmem:[%s3828_s3 + $0x130] sm:$0xff] %vm84_vm7, %v2540_v32  ;;  %2873 = vst.msk [vmem:[%s3828_s3 + $0x1c0] sm:$0xff] %vm84_vm7, %v2630_v33 }
 0x4cd   :  { %v3013_v34 = vpop.f32.mrb[12].mxu0  ;;  %v3040_v35 = vpop.f32.mrb[46].mxu1 }
 0x4ce   :  { %2858 = vst.msk [vmem:[%s3828_s3 + $0x148] sm:$0xff] %vm84_vm7, %v3013_v34  ;;  %v2550_v37 = vpop.f32.mrb[13].mxu0  ;;  %2876 = vst.msk [vmem:[%s3828_s3 + $0x1d8] sm:$0xff] %vm84_vm7, %v3040_v35  ;;  %v2640_v38 = vpop.f32.mrb[47].mxu1 }
 0x4cf   :  { %2857 = vst.msk [vmem:[%s3828_s3 + $0x140] sm:$0xff] %vm84_vm7, %v2550_v37  ;;  %2875 = vst.msk [vmem:[%s3828_s3 + $0x1d0] sm:$0xff] %vm84_vm7, %v2640_v38 }
 0x4d1   :  { %v3016_v13 = vpop.f32.mrb[14].mxu0  ;;  %v3043_v39 = vpop.f32.mrb[48].mxu1 }
 0x4d2   :  { %2860 = vst.msk [vmem:[%s3828_s3 + $0x158] sm:$0xff] %vm84_vm7, %v3016_v13  ;;  %v2560_v26 = vpop.f32.mrb[15].mxu0  ;;  %2878 = vst.msk [vmem:[%s3828_s3 + $0x1e8] sm:$0xff] %vm84_vm7, %v3043_v39  ;;  %v2650_v40 = vpop.f32.mrb[49].mxu1 }
 0x4d3   :  { %2859 = vst.msk [vmem:[%s3828_s3 + $0x150] sm:$0xff] %vm84_vm7, %v2560_v26  ;;  %2877 = vst.msk [vmem:[%s3828_s3 + $0x1e0] sm:$0xff] %vm84_vm7, %v2650_v40 }
 0x4d5   :  { %v3019_v41 = vpop.f32.mrb[16].mxu0  ;;  %v3046_v36 = vpop.f32.mrb[50].mxu1 }
 0x4d6   :  { %2862 = vst.msk [vmem:[%s3828_s3 + $0x168] sm:$0xff] %vm84_vm7, %v3019_v41  ;;  %v2570_v6 = vpop.f32.mrb[17].mxu0  ;;  %2880 = vst.msk [vmem:[%s3828_s3 + $0x1f8] sm:$0xff] %vm84_vm7, %v3046_v36  ;;  %v2660_v42 = vpop.f32.mrb[51].mxu1 }
 0x4d7   :  { %2861 = vst.msk [vmem:[%s3828_s3 + $0x160] sm:$0xff] %vm84_vm7, %v2570_v6  ;;  %2879 = vst.msk [vmem:[%s3828_s3 + $0x1f0] sm:$0xff] %vm84_vm7, %v2660_v42 }
 0x4d9   :  { %v3022_v5 = vpop.f32.mrb[18].mxu0 }
 0x4da   :  { %2864 = vst.msk [vmem:[%s3828_s3 + $0x178] sm:$0xff] %vm84_vm7, %v3022_v5  ;;  %v2580_v43 = vpop.f32.mrb[19].mxu0 }
 0x4db   :  { %2863 = vst.msk [vmem:[%s3828_s3 + $0x170] sm:$0xff] %vm84_vm7, %v2580_v43 }
 0x4dd   :  { %v3025_v44 = vpop.f32.mrb[20].mxu0 }
 0x4de   :  { %2866 = vst.msk [vmem:[%s3828_s3 + $0x188] sm:$0xff] %vm84_vm7, %v3025_v44  ;;  %v2590_v45 = vpop.f32.mrb[21].mxu0 }
 0x4df   :  { %2865 = vst.msk [vmem:[%s3828_s3 + $0x180] sm:$0xff] %vm84_vm7, %v2590_v45 }
 0x4e0   :  { %3127 = dma.done.wait [#allocation3], 256  }
 0x4e1   :  { %3128 = vsyncadd [#allocation3], 4294967040 }
 0x4e2   :  { %2727 = vsyncpa [#allocation3], 1 }

</bundles_post_ra>
